<compile_context>
chip_gen: v5e
topology: v5e:2x2
jax: 0.10.0
libtpu: 0.0.40
codegen_flags: <defaults>
</compile_context>

<pallas_src>
import functools
import math

import jax
import jax.numpy as jnp
from jax.experimental import pallas as pl
from jax.experimental.pallas import tpu as pltpu

EPS = 1e-5
ACT_DTYPE = jnp.bfloat16     # dtype of the a1 activation cache in the tiled path
FUSED_MAX_N = 1024           # batches up to this size (after 128-padding) use one fused call
MAX_TILE_N = 4096            # batch-tile cap in the tiled path


def _cdiv(a, b):
    return -(-a // b)


def _round_up(x, m):
    return _cdiv(x, m) * m


def _relu(x):
    return jnp.maximum(x, 0.0)


def _ln_norm(h):
    # LayerNorm normalization only (gamma/beta are folded into the next Linear).
    # Feature axis is axis 0 (sublanes); batch sits on the 128-wide lane axis.
    mu = jnp.mean(h, axis=0, keepdims=True)
    var = jnp.mean((h - mu) ** 2, axis=0, keepdims=True)
    return (h - mu) * jax.lax.rsqrt(var + EPS)


def _affine(w_ref, h, b_ref):
    # Transposed layout: weight (out, in), activations (in, batch_tile), bias (out, 1).
    return jnp.dot(w_ref[...], h, preferred_element_type=jnp.float32) + b_ref[...]


def _full_spec(a):
    zeros = (0,) * a.ndim
    return pl.BlockSpec(a.shape, lambda i, z=zeros: z)


def _lane_mask(n_valid, tile_n, offset):
    col = jax.lax.broadcasted_iota(jnp.int32, (1, tile_n), 1) + offset
    return (col < n_valid).astype(jnp.float32)


# -------- fused single-call kernel (whole batch in one tile, exact BN in-kernel) ------
def _fused_kernel(n_valid,
                  x_ref, w1, b1, w2, b2, w3, b3, w4, b4,
                  w5, b5, bn1g, bn1b, bn2g, bn2b, wft, bf,
                  o_ref):
    inv_n = 1.0 / n_valid
    n_pad = x_ref.shape[1]
    mask = _lane_mask(n_valid, n_pad, 0)

    h = x_ref[...]
    h = _ln_norm(_relu(_affine(w1, h, b1)))
    h = _ln_norm(_relu(_affine(w2, h, b2)))
    h = _ln_norm(_relu(_affine(w3, h, b3)))
    a1 = _relu(_affine(w4, h, b4))                      # linear1 -> relu1 (LN3 affine folded)

    # batchnorm1 (training mode): exact centered two-pass biased statistics.
    mean1 = jnp.sum(a1 * mask, axis=1, keepdims=True) * inv_n
    c1 = (a1 - mean1) * mask
    var1 = jnp.sum(c1 * c1, axis=1, keepdims=True) * inv_n
    h = (a1 - mean1) * jax.lax.rsqrt(var1 + EPS) * bn1g[...] + bn1b[...]

    a2 = _relu(_affine(w5, h, b5))                      # linear2 -> relu2
    mean2 = jnp.sum(a2 * mask, axis=1, keepdims=True) * inv_n
    c2 = (a2 - mean2) * mask
    var2 = jnp.sum(c2 * c2, axis=1, keepdims=True) * inv_n
    h = (a2 - mean2) * jax.lax.rsqrt(var2 + EPS) * bn2g[...] + bn2b[...]

    # linearFinal as a broadcast-multiply + sublane reduce: lane-dense (1, n_pad) output.
    o_ref[...] = jnp.sum(h * wft[...], axis=0, keepdims=True) + bf[...]


# -------- tiled path, stage 1: mlpForModel -> linear1 -> relu1 (+ BN1 partial stats) --
def _stage1_kernel(n_valid, tile_n,
                   x_ref, w1, b1, w2, b2, w3, b3, w4, b4,
                   a1_ref, s_ref, q_ref):
    h = x_ref[...]
    h = _ln_norm(_relu(_affine(w1, h, b1)))
    h = _ln_norm(_relu(_affine(w2, h, b2)))
    h = _ln_norm(_relu(_affine(w3, h, b3)))
    a1 = _relu(_affine(w4, h, b4))                      # linear1 -> relu1
    a1_ref[...] = a1.astype(a1_ref.dtype)               # bf16 activation cache for stages 2/3
    mask = _lane_mask(n_valid, tile_n, pl.program_id(0) * tile_n)
    am = a1 * mask                                      # padded columns excluded from stats
    s_ref[0] = jnp.sum(am, axis=1, keepdims=True)       # (32, 1) partial sum
    q_ref[0] = jnp.sum(am * am, axis=1, keepdims=True)  # (32, 1) partial sum of squares


# -------- tiled path, stage 2: (BN1-folded) linear2 -> relu2, BN2 partial stats only --
def _stage2_kernel(n_valid, tile_n, a1_ref, w5, b5, s_ref, q_ref):
    a1 = a1_ref[...].astype(jnp.float32)
    a2 = _relu(_affine(w5, a1, b5))                     # BN1 folded into w5/b5
    mask = _lane_mask(n_valid, tile_n, pl.program_id(0) * tile_n)
    am = a2 * mask
    s_ref[0] = jnp.sum(am, axis=1, keepdims=True)
    q_ref[0] = jnp.sum(am * am, axis=1, keepdims=True)


# -------- tiled path, stage 3: recompute a2, BN2 + linearFinal folded, lane-dense y ---
def _stage3_kernel(a1_ref, w5, b5, wft, bf, o_ref):
    a1 = a1_ref[...].astype(jnp.float32)
    a2 = _relu(_affine(w5, a1, b5))                     # recompute a2: no a2 HBM round trip
    o_ref[...] = jnp.sum(a2 * wft[...], axis=0, keepdims=True) + bf[...]


# -------- wrapper ----------------------------------------------------------------------
@jax.jit
def simple_mlp_forward(x, params):
    (W1, b1, g1, be1, W2, b2, g2, be2, W3, b3, g3, be3,
     W4, b4, bn1g, bn1b, W5, b5, bn2g, bn2b, Wf, bf) = params
    n, f = x.shape
    act_bytes = jnp.dtype(ACT_DTYPE).itemsize

    # Static fold of each LayerNorm's gamma/beta into the following Linear:
    #   W_next @ (norm * g + be) + b_next == (W_next * g.T) @ norm + (W_next @ be + b_next)
    W2f, b2f = W2 * g1.T, W2 @ be1 + b2
    W3f, b3f = W3 * g2.T, W3 @ be2 + b3
    W4f, b4f = W4 * g3.T, W4 @ be3 + b4

    n128 = _round_up(n, 128)

    if n128 <= FUSED_MAX_N:
        # ------- single fused call: exact in-kernel BN stats, no inter-stage HBM traffic
        n_pad = n128
        x_t = jnp.pad(x.T, ((0, 0), (0, n_pad - n)))
        p = (W1, b1, W2f, b2f, W3f, b3f, W4f, b4f,
             W5, b5, bn1g, bn1b, bn2g, bn2b, Wf.T, bf)
        y = pl.pallas_call(
            functools.partial(_fused_kernel, n),
            grid=(1,),
            in_specs=[pl.BlockSpec((f, n_pad), lambda i: (0, 0))]
                     + [_full_spec(a) for a in p],
            out_specs=pl.BlockSpec((1, n_pad), lambda i: (0, 0)),
            out_shape=jax.ShapeDtypeStruct((1, n_pad), jnp.float32),
            compiler_params=pltpu.CompilerParams(dimension_semantics=("arbitrary",)),
            cost_estimate=pl.CostEstimate(
                flops=2 * n_pad * (f * 32 + 4 * 32 * 32 + 32),
                transcendentals=3 * n_pad + 4 * 32,
                bytes_accessed=n_pad * (f + 1) * 4),
        )(x_t, *p)
        return y.reshape(n_pad)[:n]

    # ------- tiled 3-call path for large batches
    num_tiles = max(2, _cdiv(n128, MAX_TILE_N))   # >= 2 tiles so v7x megacore engages
    tile_n = _round_up(_cdiv(n128, num_tiles), 128)
    n_pad = num_tiles * tile_n
    x_t = jnp.pad(x.T, ((0, 0), (0, n_pad - n)))

    act_spec = pl.BlockSpec((32, tile_n), lambda i: (0, i))
    stat_spec = pl.BlockSpec((1, 32, 1), lambda i: (i, 0, 0))
    stat_shape = jax.ShapeDtypeStruct((num_tiles, 32, 1), jnp.float32)
    parallel = pltpu.CompilerParams(dimension_semantics=("parallel",))

    # ---- stage 1
    p1 = (W1, b1, W2f, b2f, W3f, b3f, W4f, b4f)
    a1, s1, q1 = pl.pallas_call(
        functools.partial(_stage1_kernel, n, tile_n),
        grid=(num_tiles,),
        in_specs=[pl.BlockSpec((f, tile_n), lambda i: (0, i))]
                 + [_full_spec(a) for a in p1],
        out_specs=(act_spec, stat_spec, stat_spec),
        out_shape=(jax.ShapeDtypeStruct((32, n_pad), ACT_DTYPE), stat_shape, stat_shape),
        compiler_params=parallel,
        cost_estimate=pl.CostEstimate(
            flops=2 * n_pad * (f * 32 + 3 * 32 * 32),
            transcendentals=3 * n_pad,
            bytes_accessed=n_pad * (f * 4 + 32 * act_bytes)),
    )(x_t, *p1)

    # BatchNorm1d #1 (training mode, biased variance), folded into linear2.
    # NOTE: E[x^2]-E[x]^2 in f32 with a clamp to guard against cancellation.
    mean1 = s1.sum(axis=0) / n
    var1 = jnp.maximum(q1.sum(axis=0) / n - mean1 * mean1, 0.0)
    scale1 = bn1g * jax.lax.rsqrt(var1 + EPS)            # (32, 1)
    shift1 = bn1b - mean1 * scale1                        # (32, 1)
    W5f, b5f = W5 * scale1.T, W5 @ shift1 + b5

    # ---- stage 2 (stats only; a2 is never written to HBM)
    s2, q2 = pl.pallas_call(
        functools.partial(_stage2_kernel, n, tile_n),
        grid=(num_tiles,),
        in_specs=[act_spec] + [_full_spec(a) for a in (W5f, b5f)],
        out_specs=(stat_spec, stat_spec),
        out_shape=(stat_shape, stat_shape),
        compiler_params=parallel,
        cost_estimate=pl.CostEstimate(
            flops=2 * n_pad * 32 * 32,
            transcendentals=0,
            bytes_accessed=n_pad * 32 * act_bytes),
    )(a1, W5f, b5f)

    # BatchNorm1d #2 folded into linearFinal.
    mean2 = s2.sum(axis=0) / n
    var2 = jnp.maximum(q2.sum(axis=0) / n - mean2 * mean2, 0.0)
    scale2 = bn2g * jax.lax.rsqrt(var2 + EPS)
    shift2 = bn2b - mean2 * scale2
    Wff_t = Wf.T * scale2                                 # (32, 1)
    bff = Wf @ shift2 + bf                                # (1, 1)

    # ---- stage 3 (recompute a2, lane-dense logits)
    y = pl.pallas_call(
        _stage3_kernel,
        grid=(num_tiles,),
        in_specs=[act_spec] + [_full_spec(a) for a in (W5f, b5f, Wff_t, bff)],
        out_specs=pl.BlockSpec((1, tile_n), lambda i: (0, i)),
        out_shape=jax.ShapeDtypeStruct((1, n_pad), jnp.float32),
        compiler_params=parallel,
        cost_estimate=pl.CostEstimate(
            flops=2 * n_pad * (32 * 32 + 32),
            transcendentals=0,
            bytes_accessed=n_pad * (32 * act_bytes + 4)),
    )(a1, W5f, b5f, Wff_t, bff)

    # yPred = x.squeeze()
    return y.reshape(n_pad)[:n]


# -------- parameter construction (PyTorch-native layouts) ------------------------------
def _init_linear(key, fan_in, fan_out):
    kw, kb = jax.random.split(key)
    bound = 1.0 / math.sqrt(fan_in)
    w = jax.random.uniform(kw, (fan_out, fan_in), jnp.float32, -bound, bound)  # (out, in)
    b = jax.random.uniform(kb, (fan_out, 1), jnp.float32, -bound, bound)       # (out, 1)
    return w, b


def _affine_params(key, m):
    # PyTorch default would be gamma=1, beta=0; randomize slightly so the smoke test
    # actually exercises the LN/BN affine folds.
    kg, kb = jax.random.split(key)
    gamma = 1.0 + 0.1 * jax.random.normal(kg, (m, 1), jnp.float32)
    beta = 0.1 * jax.random.normal(kb, (m, 1), jnp.float32)
    return gamma, beta


def make_params(input_feature_size, key):
    keys = jax.random.split(key, 11)
    p = []
    for i, fan_in in enumerate([input_feature_size, 32, 32]):     # mlpForModel
        w, b = _init_linear(keys[2 * i], fan_in, 32)
        g, be = _affine_params(keys[2 * i + 1], 32)
        p += [w, b, g, be]
    w4, b4 = _init_linear(keys[6], 32, 32)                        # linear1 + batchnorm1
    g4, be4 = _affine_params(keys[7], 32)
    p += [w4, b4, g4, be4]
    w5, b5 = _init_linear(keys[8], 32, 32)                        # linear2 + batchnorm2
    g5, be5 = _affine_params(keys[9], 32)
    p += [w5, b5, g5, be5]
    wf, bf = _init_linear(keys[10], 32, 1)                        # linearFinal: (1,32), (1,1)
    p += [wf, bf]
    return tuple(p)


# -------- pure-JAX reference for the smoke check ----------------------------------------
def _reference_forward(x, params):
    (W1, b1, g1, be1, W2, b2, g2, be2, W3, b3, g3, be3,
     W4, b4, bn1g, bn1b, W5, b5, bn2g, bn2b, Wf, bf) = params

    def lin(h, w, b):
        return h @ w.T + b.T

    def ln(h, g, b):
        mu = h.mean(-1, keepdims=True)
        v = ((h - mu) ** 2).mean(-1, keepdims=True)
        return (h - mu) / jnp.sqrt(v + EPS) * g.T + b.T

    def bn(h, g, b):
        mu = h.mean(0, keepdims=True)
        v = ((h - mu) ** 2).mean(0, keepdims=True)
        return (h - mu) / jnp.sqrt(v + EPS) * g.T + b.T

    h = ln(_relu(lin(x, W1, b1)), g1, be1)
    h = ln(_relu(lin(h, W2, b2)), g2, be2)
    h = ln(_relu(lin(h, W3, b3)), g3, be3)
    h = bn(_relu(lin(h, W4, b4)), bn1g, bn1b)
    h = bn(_relu(lin(h, W5, b5)), bn2g, bn2b)
    return (h @ Wf.T + bf.T)[:, 0]


if __name__ == "__main__":
    F = 16  # inputFeatureSize

    key = jax.random.PRNGKey(0)
    k_x, k_p, k_x2 = jax.random.split(key, 3)
    params = make_params(F, k_p)

    # Small batch -> fused single-call path (exact f32 end to end).
    x_small = jax.random.normal(k_x, (8, F), dtype=jnp.float32)
    y_small = simple_mlp_forward(x_small, params)
    jax.block_until_ready(y_small)
    assert y_small.shape == (8,), y_small.shape
    y_ref_small = _reference_forward(x_small, params)
    assert bool(jnp.allclose(y_small, y_ref_small, rtol=5e-2, atol=5e-2)), (y_small, y_ref_small)

    # Larger batch -> tiled 3-stage path (BN folds, bf16 a1 cache, a2 recompute).
    x_big = jax.random.normal(k_x2, (1500, F), dtype=jnp.float32)
    y_big = simple_mlp_forward(x_big, params)
    jax.block_until_ready(y_big)
    assert y_big.shape == (1500,), y_big.shape
    y_ref_big = _reference_forward(x_big, params)
    # Looser tolerance accounts for the bfloat16 activation cache.
    assert bool(jnp.allclose(y_big, y_ref_big, rtol=1e-1, atol=1e-1)), (y_big, y_ref_big)

    print("KERNEL_OK")
</pallas_src>

<mosaic_0001>
module attributes {stable_mosaic.version = 11 : i64} {
  func.func @_fused_kernel(%arg0: i32, %arg1: memref<16x128xf32, #tpu.memory_space<vmem>>, %arg2: memref<32x16xf32, #tpu.memory_space<vmem>>, %arg3: memref<32x1xf32, #tpu.memory_space<vmem>>, %arg4: memref<32x32xf32, #tpu.memory_space<vmem>>, %arg5: memref<32x1xf32, #tpu.memory_space<vmem>>, %arg6: memref<32x32xf32, #tpu.memory_space<vmem>>, %arg7: memref<32x1xf32, #tpu.memory_space<vmem>>, %arg8: memref<32x32xf32, #tpu.memory_space<vmem>>, %arg9: memref<32x1xf32, #tpu.memory_space<vmem>>, %arg10: memref<32x32xf32, #tpu.memory_space<vmem>>, %arg11: memref<32x1xf32, #tpu.memory_space<vmem>>, %arg12: memref<32x1xf32, #tpu.memory_space<vmem>>, %arg13: memref<32x1xf32, #tpu.memory_space<vmem>>, %arg14: memref<32x1xf32, #tpu.memory_space<vmem>>, %arg15: memref<32x1xf32, #tpu.memory_space<vmem>>, %arg16: memref<32x1xf32, #tpu.memory_space<vmem>>, %arg17: memref<1x1xf32, #tpu.memory_space<vmem>>, %arg18: memref<1x128xf32, #tpu.memory_space<vmem>>) attributes {dimension_semantics = [#tpu.dimension_semantics<arbitrary>], iteration_bounds = array<i64: 1>, scalar_prefetch = 0 : i64, scratch_operands = 0 : i64, tpu.core_type = #tpu.core_type<tc>, window_params = [{pipeline_mode = #tpu.pipeline_mode<synchronous>, transform_indices = @transform_0, window_bounds = array<i64: 16, 128>}, {pipeline_mode = #tpu.pipeline_mode<synchronous>, transform_indices = @transform_1, window_bounds = array<i64: 32, 16>}, {pipeline_mode = #tpu.pipeline_mode<synchronous>, transform_indices = @transform_2, window_bounds = array<i64: 32, 1>}, {pipeline_mode = #tpu.pipeline_mode<synchronous>, transform_indices = @transform_3, window_bounds = array<i64: 32, 32>}, {pipeline_mode = #tpu.pipeline_mode<synchronous>, transform_indices = @transform_4, window_bounds = array<i64: 32, 1>}, {pipeline_mode = #tpu.pipeline_mode<synchronous>, transform_indices = @transform_5, window_bounds = array<i64: 32, 32>}, {pipeline_mode = #tpu.pipeline_mode<synchronous>, transform_indices = @transform_6, window_bounds = array<i64: 32, 1>}, {pipeline_mode = #tpu.pipeline_mode<synchronous>, transform_indices = @transform_7, window_bounds = array<i64: 32, 32>}, {pipeline_mode = #tpu.pipeline_mode<synchronous>, transform_indices = @transform_8, window_bounds = array<i64: 32, 1>}, {pipeline_mode = #tpu.pipeline_mode<synchronous>, transform_indices = @transform_9, window_bounds = array<i64: 32, 32>}, {pipeline_mode = #tpu.pipeline_mode<synchronous>, transform_indices = @transform_10, window_bounds = array<i64: 32, 1>}, {pipeline_mode = #tpu.pipeline_mode<synchronous>, transform_indices = @transform_11, window_bounds = array<i64: 32, 1>}, {pipeline_mode = #tpu.pipeline_mode<synchronous>, transform_indices = @transform_12, window_bounds = array<i64: 32, 1>}, {pipeline_mode = #tpu.pipeline_mode<synchronous>, transform_indices = @transform_13, window_bounds = array<i64: 32, 1>}, {pipeline_mode = #tpu.pipeline_mode<synchronous>, transform_indices = @transform_14, window_bounds = array<i64: 32, 1>}, {pipeline_mode = #tpu.pipeline_mode<synchronous>, transform_indices = @transform_15, window_bounds = array<i64: 32, 1>}, {pipeline_mode = #tpu.pipeline_mode<synchronous>, transform_indices = @transform_16, window_bounds = array<i64: 1, 1>}, {pipeline_mode = #tpu.pipeline_mode<synchronous>, transform_indices = @transform_17, window_bounds = array<i64: 1, 128>}]} {
    %0 = tpu.iota {dimensions = array<i32: 1>} : vector<1x128xi32>
    %c0_i32 = arith.constant 0 : i32
    %1 = vector.broadcast %c0_i32 : i32 to vector<1x128xi32>
    %2 = arith.addi %0, %1 : vector<1x128xi32>
    %c8_i32 = arith.constant 8 : i32
    %3 = vector.broadcast %c8_i32 : i32 to vector<1x128xi32>
    %4 = arith.cmpi slt, %2, %3 : vector<1x128xi32>
    %5 = arith.extui %4 : vector<1x128xi1> to vector<1x128xi32>
    %6 = arith.sitofp %5 : vector<1x128xi32> to vector<1x128xf32>
    %c0 = arith.constant 0 : index
    %c0_0 = arith.constant 0 : index
    %7 = vector.load %arg1[%c0, %c0_0] : memref<16x128xf32, #tpu.memory_space<vmem>>, vector<16x128xf32>
    %c0_1 = arith.constant 0 : index
    %c0_2 = arith.constant 0 : index
    %8 = vector.load %arg2[%c0_1, %c0_2] : memref<32x16xf32, #tpu.memory_space<vmem>>, vector<32x16xf32>
    %cst = arith.constant dense<0.000000e+00> : vector<32x128xf32>
    %9 = tpu.matmul %8, %7, %cst {dimension_numbers = #tpu.dot_dimension_numbers<[1], [0], [0], [1], [0, 0, 1, 1], [], []>} : vector<32x16xf32>, vector<16x128xf32>, vector<32x128xf32> -> vector<32x128xf32>
    %c0_3 = arith.constant 0 : index
    %c0_4 = arith.constant 0 : index
    %10 = vector.load %arg3[%c0_3, %c0_4] : memref<32x1xf32, #tpu.memory_space<vmem>>, vector<32x1xf32>
    %11 = vector.broadcast %10 : vector<32x1xf32> to vector<32x128xf32>
    %12 = arith.addf %9, %11 : vector<32x128xf32>
    %cst_5 = arith.constant 0.000000e+00 : f32
    %13 = vector.broadcast %cst_5 : f32 to vector<32x128xf32>
    %14 = arith.maximumf %12, %13 : vector<32x128xf32>
    %cst_6 = arith.constant dense<0.000000e+00> : vector<128xf32>
    %15 = vector.multi_reduction <add>, %14, %cst_6 [0] : vector<32x128xf32> to vector<128xf32>
    %16 = vector.shape_cast %15 : vector<128xf32> to vector<1x128xf32>
    %cst_7 = arith.constant 3.200000e+01 : f32
    %17 = vector.broadcast %cst_7 : f32 to vector<1x128xf32>
    %18 = arith.divf %16, %17 : vector<1x128xf32>
    %19 = vector.broadcast %18 : vector<1x128xf32> to vector<32x128xf32>
    %20 = arith.subf %14, %19 : vector<32x128xf32>
    %21 = arith.mulf %20, %20 : vector<32x128xf32>
    %cst_8 = arith.constant dense<0.000000e+00> : vector<128xf32>
    %22 = vector.multi_reduction <add>, %21, %cst_8 [0] : vector<32x128xf32> to vector<128xf32>
    %23 = vector.shape_cast %22 : vector<128xf32> to vector<1x128xf32>
    %cst_9 = arith.constant 3.200000e+01 : f32
    %24 = vector.broadcast %cst_9 : f32 to vector<1x128xf32>
    %25 = arith.divf %23, %24 : vector<1x128xf32>
    %26 = vector.broadcast %18 : vector<1x128xf32> to vector<32x128xf32>
    %27 = arith.subf %14, %26 : vector<32x128xf32>
    %cst_10 = arith.constant 9.99999974E-6 : f32
    %28 = vector.broadcast %cst_10 : f32 to vector<1x128xf32>
    %29 = arith.addf %25, %28 : vector<1x128xf32>
    %30 = math.rsqrt %29 : vector<1x128xf32>
    %31 = vector.broadcast %30 : vector<1x128xf32> to vector<32x128xf32>
    %32 = arith.mulf %27, %31 : vector<32x128xf32>
    %c0_11 = arith.constant 0 : index
    %c0_12 = arith.constant 0 : index
    %33 = vector.load %arg4[%c0_11, %c0_12] : memref<32x32xf32, #tpu.memory_space<vmem>>, vector<32x32xf32>
    %cst_13 = arith.constant dense<0.000000e+00> : vector<32x128xf32>
    %34 = tpu.matmul %33, %32, %cst_13 {dimension_numbers = #tpu.dot_dimension_numbers<[1], [0], [0], [1], [0, 0, 1, 1], [], []>} : vector<32x32xf32>, vector<32x128xf32>, vector<32x128xf32> -> vector<32x128xf32>
    %c0_14 = arith.constant 0 : index
    %c0_15 = arith.constant 0 : index
    %35 = vector.load %arg5[%c0_14, %c0_15] : memref<32x1xf32, #tpu.memory_space<vmem>>, vector<32x1xf32>
    %36 = vector.broadcast %35 : vector<32x1xf32> to vector<32x128xf32>
    %37 = arith.addf %34, %36 : vector<32x128xf32>
    %cst_16 = arith.constant 0.000000e+00 : f32
    %38 = vector.broadcast %cst_16 : f32 to vector<32x128xf32>
    %39 = arith.maximumf %37, %38 : vector<32x128xf32>
    %cst_17 = arith.constant dense<0.000000e+00> : vector<128xf32>
    %40 = vector.multi_reduction <add>, %39, %cst_17 [0] : vector<32x128xf32> to vector<128xf32>
    %41 = vector.shape_cast %40 : vector<128xf32> to vector<1x128xf32>
    %cst_18 = arith.constant 3.200000e+01 : f32
    %42 = vector.broadcast %cst_18 : f32 to vector<1x128xf32>
    %43 = arith.divf %41, %42 : vector<1x128xf32>
    %44 = vector.broadcast %43 : vector<1x128xf32> to vector<32x128xf32>
    %45 = arith.subf %39, %44 : vector<32x128xf32>
    %46 = arith.mulf %45, %45 : vector<32x128xf32>
    %cst_19 = arith.constant dense<0.000000e+00> : vector<128xf32>
    %47 = vector.multi_reduction <add>, %46, %cst_19 [0] : vector<32x128xf32> to vector<128xf32>
    %48 = vector.shape_cast %47 : vector<128xf32> to vector<1x128xf32>
    %cst_20 = arith.constant 3.200000e+01 : f32
    %49 = vector.broadcast %cst_20 : f32 to vector<1x128xf32>
    %50 = arith.divf %48, %49 : vector<1x128xf32>
    %51 = vector.broadcast %43 : vector<1x128xf32> to vector<32x128xf32>
    %52 = arith.subf %39, %51 : vector<32x128xf32>
    %cst_21 = arith.constant 9.99999974E-6 : f32
    %53 = vector.broadcast %cst_21 : f32 to vector<1x128xf32>
    %54 = arith.addf %50, %53 : vector<1x128xf32>
    %55 = math.rsqrt %54 : vector<1x128xf32>
    %56 = vector.broadcast %55 : vector<1x128xf32> to vector<32x128xf32>
    %57 = arith.mulf %52, %56 : vector<32x128xf32>
    %c0_22 = arith.constant 0 : index
    %c0_23 = arith.constant 0 : index
    %58 = vector.load %arg6[%c0_22, %c0_23] : memref<32x32xf32, #tpu.memory_space<vmem>>, vector<32x32xf32>
    %cst_24 = arith.constant dense<0.000000e+00> : vector<32x128xf32>
    %59 = tpu.matmul %58, %57, %cst_24 {dimension_numbers = #tpu.dot_dimension_numbers<[1], [0], [0], [1], [0, 0, 1, 1], [], []>} : vector<32x32xf32>, vector<32x128xf32>, vector<32x128xf32> -> vector<32x128xf32>
    %c0_25 = arith.constant 0 : index
    %c0_26 = arith.constant 0 : index
    %60 = vector.load %arg7[%c0_25, %c0_26] : memref<32x1xf32, #tpu.memory_space<vmem>>, vector<32x1xf32>
    %61 = vector.broadcast %60 : vector<32x1xf32> to vector<32x128xf32>
    %62 = arith.addf %59, %61 : vector<32x128xf32>
    %cst_27 = arith.constant 0.000000e+00 : f32
    %63 = vector.broadcast %cst_27 : f32 to vector<32x128xf32>
    %64 = arith.maximumf %62, %63 : vector<32x128xf32>
    %cst_28 = arith.constant dense<0.000000e+00> : vector<128xf32>
    %65 = vector.multi_reduction <add>, %64, %cst_28 [0] : vector<32x128xf32> to vector<128xf32>
    %66 = vector.shape_cast %65 : vector<128xf32> to vector<1x128xf32>
    %cst_29 = arith.constant 3.200000e+01 : f32
    %67 = vector.broadcast %cst_29 : f32 to vector<1x128xf32>
    %68 = arith.divf %66, %67 : vector<1x128xf32>
    %69 = vector.broadcast %68 : vector<1x128xf32> to vector<32x128xf32>
    %70 = arith.subf %64, %69 : vector<32x128xf32>
    %71 = arith.mulf %70, %70 : vector<32x128xf32>
    %cst_30 = arith.constant dense<0.000000e+00> : vector<128xf32>
    %72 = vector.multi_reduction <add>, %71, %cst_30 [0] : vector<32x128xf32> to vector<128xf32>
    %73 = vector.shape_cast %72 : vector<128xf32> to vector<1x128xf32>
    %cst_31 = arith.constant 3.200000e+01 : f32
    %74 = vector.broadcast %cst_31 : f32 to vector<1x128xf32>
    %75 = arith.divf %73, %74 : vector<1x128xf32>
    %76 = vector.broadcast %68 : vector<1x128xf32> to vector<32x128xf32>
    %77 = arith.subf %64, %76 : vector<32x128xf32>
    %cst_32 = arith.constant 9.99999974E-6 : f32
    %78 = vector.broadcast %cst_32 : f32 to vector<1x128xf32>
    %79 = arith.addf %75, %78 : vector<1x128xf32>
    %80 = math.rsqrt %79 : vector<1x128xf32>
    %81 = vector.broadcast %80 : vector<1x128xf32> to vector<32x128xf32>
    %82 = arith.mulf %77, %81 : vector<32x128xf32>
    %c0_33 = arith.constant 0 : index
    %c0_34 = arith.constant 0 : index
    %83 = vector.load %arg8[%c0_33, %c0_34] : memref<32x32xf32, #tpu.memory_space<vmem>>, vector<32x32xf32>
    %cst_35 = arith.constant dense<0.000000e+00> : vector<32x128xf32>
    %84 = tpu.matmul %83, %82, %cst_35 {dimension_numbers = #tpu.dot_dimension_numbers<[1], [0], [0], [1], [0, 0, 1, 1], [], []>} : vector<32x32xf32>, vector<32x128xf32>, vector<32x128xf32> -> vector<32x128xf32>
    %c0_36 = arith.constant 0 : index
    %c0_37 = arith.constant 0 : index
    %85 = vector.load %arg9[%c0_36, %c0_37] : memref<32x1xf32, #tpu.memory_space<vmem>>, vector<32x1xf32>
    %86 = vector.broadcast %85 : vector<32x1xf32> to vector<32x128xf32>
    %87 = arith.addf %84, %86 : vector<32x128xf32>
    %cst_38 = arith.constant 0.000000e+00 : f32
    %88 = vector.broadcast %cst_38 : f32 to vector<32x128xf32>
    %89 = arith.maximumf %87, %88 : vector<32x128xf32>
    %90 = vector.broadcast %6 : vector<1x128xf32> to vector<32x128xf32>
    %91 = arith.mulf %89, %90 : vector<32x128xf32>
    %cst_39 = arith.constant dense<0.000000e+00> : vector<32xf32>
    %92 = vector.multi_reduction <add>, %91, %cst_39 [1] : vector<32x128xf32> to vector<32xf32>
    %93 = vector.shape_cast %92 : vector<32xf32> to vector<32x1xf32>
    %cst_40 = arith.constant 1.250000e-01 : f32
    %94 = vector.broadcast %cst_40 : f32 to vector<32x1xf32>
    %95 = arith.mulf %93, %94 : vector<32x1xf32>
    %96 = vector.broadcast %95 : vector<32x1xf32> to vector<32x128xf32>
    %97 = arith.subf %89, %96 : vector<32x128xf32>
    %98 = vector.broadcast %6 : vector<1x128xf32> to vector<32x128xf32>
    %99 = arith.mulf %97, %98 : vector<32x128xf32>
    %100 = arith.mulf %99, %99 : vector<32x128xf32>
    %cst_41 = arith.constant dense<0.000000e+00> : vector<32xf32>
    %101 = vector.multi_reduction <add>, %100, %cst_41 [1] : vector<32x128xf32> to vector<32xf32>
    %102 = vector.shape_cast %101 : vector<32xf32> to vector<32x1xf32>
    %cst_42 = arith.constant 1.250000e-01 : f32
    %103 = vector.broadcast %cst_42 : f32 to vector<32x1xf32>
    %104 = arith.mulf %102, %103 : vector<32x1xf32>
    %105 = vector.broadcast %95 : vector<32x1xf32> to vector<32x128xf32>
    %106 = arith.subf %89, %105 : vector<32x128xf32>
    %cst_43 = arith.constant 9.99999974E-6 : f32
    %107 = vector.broadcast %cst_43 : f32 to vector<32x1xf32>
    %108 = arith.addf %104, %107 : vector<32x1xf32>
    %109 = math.rsqrt %108 : vector<32x1xf32>
    %110 = vector.broadcast %109 : vector<32x1xf32> to vector<32x128xf32>
    %111 = arith.mulf %106, %110 : vector<32x128xf32>
    %c0_44 = arith.constant 0 : index
    %c0_45 = arith.constant 0 : index
    %112 = vector.load %arg12[%c0_44, %c0_45] : memref<32x1xf32, #tpu.memory_space<vmem>>, vector<32x1xf32>
    %113 = vector.broadcast %112 : vector<32x1xf32> to vector<32x128xf32>
    %114 = arith.mulf %111, %113 : vector<32x128xf32>
    %c0_46 = arith.constant 0 : index
    %c0_47 = arith.constant 0 : index
    %115 = vector.load %arg13[%c0_46, %c0_47] : memref<32x1xf32, #tpu.memory_space<vmem>>, vector<32x1xf32>
    %116 = vector.broadcast %115 : vector<32x1xf32> to vector<32x128xf32>
    %117 = arith.addf %114, %116 : vector<32x128xf32>
    %c0_48 = arith.constant 0 : index
    %c0_49 = arith.constant 0 : index
    %118 = vector.load %arg10[%c0_48, %c0_49] : memref<32x32xf32, #tpu.memory_space<vmem>>, vector<32x32xf32>
    %cst_50 = arith.constant dense<0.000000e+00> : vector<32x128xf32>
    %119 = tpu.matmul %118, %117, %cst_50 {dimension_numbers = #tpu.dot_dimension_numbers<[1], [0], [0], [1], [0, 0, 1, 1], [], []>} : vector<32x32xf32>, vector<32x128xf32>, vector<32x128xf32> -> vector<32x128xf32>
    %c0_51 = arith.constant 0 : index
    %c0_52 = arith.constant 0 : index
    %120 = vector.load %arg11[%c0_51, %c0_52] : memref<32x1xf32, #tpu.memory_space<vmem>>, vector<32x1xf32>
    %121 = vector.broadcast %120 : vector<32x1xf32> to vector<32x128xf32>
    %122 = arith.addf %119, %121 : vector<32x128xf32>
    %cst_53 = arith.constant 0.000000e+00 : f32
    %123 = vector.broadcast %cst_53 : f32 to vector<32x128xf32>
    %124 = arith.maximumf %122, %123 : vector<32x128xf32>
    %125 = vector.broadcast %6 : vector<1x128xf32> to vector<32x128xf32>
    %126 = arith.mulf %124, %125 : vector<32x128xf32>
    %cst_54 = arith.constant dense<0.000000e+00> : vector<32xf32>
    %127 = vector.multi_reduction <add>, %126, %cst_54 [1] : vector<32x128xf32> to vector<32xf32>
    %128 = vector.shape_cast %127 : vector<32xf32> to vector<32x1xf32>
    %cst_55 = arith.constant 1.250000e-01 : f32
    %129 = vector.broadcast %cst_55 : f32 to vector<32x1xf32>
    %130 = arith.mulf %128, %129 : vector<32x1xf32>
    %131 = vector.broadcast %130 : vector<32x1xf32> to vector<32x128xf32>
    %132 = arith.subf %124, %131 : vector<32x128xf32>
    %133 = vector.broadcast %6 : vector<1x128xf32> to vector<32x128xf32>
    %134 = arith.mulf %132, %133 : vector<32x128xf32>
    %135 = arith.mulf %134, %134 : vector<32x128xf32>
    %cst_56 = arith.constant dense<0.000000e+00> : vector<32xf32>
    %136 = vector.multi_reduction <add>, %135, %cst_56 [1] : vector<32x128xf32> to vector<32xf32>
    %137 = vector.shape_cast %136 : vector<32xf32> to vector<32x1xf32>
    %cst_57 = arith.constant 1.250000e-01 : f32
    %138 = vector.broadcast %cst_57 : f32 to vector<32x1xf32>
    %139 = arith.mulf %137, %138 : vector<32x1xf32>
    %140 = vector.broadcast %130 : vector<32x1xf32> to vector<32x128xf32>
    %141 = arith.subf %124, %140 : vector<32x128xf32>
    %cst_58 = arith.constant 9.99999974E-6 : f32
    %142 = vector.broadcast %cst_58 : f32 to vector<32x1xf32>
    %143 = arith.addf %139, %142 : vector<32x1xf32>
    %144 = math.rsqrt %143 : vector<32x1xf32>
    %145 = vector.broadcast %144 : vector<32x1xf32> to vector<32x128xf32>
    %146 = arith.mulf %141, %145 : vector<32x128xf32>
    %c0_59 = arith.constant 0 : index
    %c0_60 = arith.constant 0 : index
    %147 = vector.load %arg14[%c0_59, %c0_60] : memref<32x1xf32, #tpu.memory_space<vmem>>, vector<32x1xf32>
    %148 = vector.broadcast %147 : vector<32x1xf32> to vector<32x128xf32>
    %149 = arith.mulf %146, %148 : vector<32x128xf32>
    %c0_61 = arith.constant 0 : index
    %c0_62 = arith.constant 0 : index
    %150 = vector.load %arg15[%c0_61, %c0_62] : memref<32x1xf32, #tpu.memory_space<vmem>>, vector<32x1xf32>
    %151 = vector.broadcast %150 : vector<32x1xf32> to vector<32x128xf32>
    %152 = arith.addf %149, %151 : vector<32x128xf32>
    %c0_63 = arith.constant 0 : index
    %c0_64 = arith.constant 0 : index
    %153 = vector.load %arg16[%c0_63, %c0_64] : memref<32x1xf32, #tpu.memory_space<vmem>>, vector<32x1xf32>
    %154 = vector.broadcast %153 : vector<32x1xf32> to vector<32x128xf32>
    %155 = arith.mulf %152, %154 : vector<32x128xf32>
    %cst_65 = arith.constant dense<0.000000e+00> : vector<128xf32>
    %156 = vector.multi_reduction <add>, %155, %cst_65 [0] : vector<32x128xf32> to vector<128xf32>
    %157 = vector.shape_cast %156 : vector<128xf32> to vector<1x128xf32>
    %c0_66 = arith.constant 0 : index
    %c0_67 = arith.constant 0 : index
    %158 = vector.load %arg17[%c0_66, %c0_67] : memref<1x1xf32, #tpu.memory_space<vmem>>, vector<1x1xf32>
    %159 = vector.broadcast %158 : vector<1x1xf32> to vector<1x128xf32>
    %160 = arith.addf %157, %159 : vector<1x128xf32>
    %c0_68 = arith.constant 0 : index
    %c0_69 = arith.constant 0 : index
    %161 = vector.load %arg18[%c0_68, %c0_69] : memref<1x128xf32, #tpu.memory_space<vmem>>, vector<1x128xf32>
    tpu.vector_store %arg18[%c0_68, %c0_69], %160 {strides = array<i32>} : memref<1x128xf32, #tpu.memory_space<vmem>>, vector<1x128xf32>,
    return
  }
  func.func @transform_0(%arg0: i32) -> (i32, i32) {
    %c0_i32 = arith.constant 0 : i32
    %c0_i32_0 = arith.constant 0 : i32
    %c0_i32_1 = arith.constant 0 : i32
    return %c0_i32, %c0_i32_0 : i32, i32
  }
  func.func @transform_1(%arg0: i32) -> (i32, i32) {
    %c0_i32 = arith.constant 0 : i32
    %c0_i32_0 = arith.constant 0 : i32
    %c0_i32_1 = arith.constant 0 : i32
    return %c0_i32, %c0_i32_0 : i32, i32
  }
  func.func @transform_2(%arg0: i32) -> (i32, i32) {
    %c0_i32 = arith.constant 0 : i32
    %c0_i32_0 = arith.constant 0 : i32
    %c0_i32_1 = arith.constant 0 : i32
    return %c0_i32, %c0_i32_0 : i32, i32
  }
  func.func @transform_3(%arg0: i32) -> (i32, i32) {
    %c0_i32 = arith.constant 0 : i32
    %c0_i32_0 = arith.constant 0 : i32
    %c0_i32_1 = arith.constant 0 : i32
    return %c0_i32, %c0_i32_0 : i32, i32
  }
  func.func @transform_4(%arg0: i32) -> (i32, i32) {
    %c0_i32 = arith.constant 0 : i32
    %c0_i32_0 = arith.constant 0 : i32
    %c0_i32_1 = arith.constant 0 : i32
    return %c0_i32, %c0_i32_0 : i32, i32
  }
  func.func @transform_5(%arg0: i32) -> (i32, i32) {
    %c0_i32 = arith.constant 0 : i32
    %c0_i32_0 = arith.constant 0 : i32
    %c0_i32_1 = arith.constant 0 : i32
    return %c0_i32, %c0_i32_0 : i32, i32
  }
  func.func @transform_6(%arg0: i32) -> (i32, i32) {
    %c0_i32 = arith.constant 0 : i32
    %c0_i32_0 = arith.constant 0 : i32
    %c0_i32_1 = arith.constant 0 : i32
    return %c0_i32, %c0_i32_0 : i32, i32
  }
  func.func @transform_7(%arg0: i32) -> (i32, i32) {
    %c0_i32 = arith.constant 0 : i32
    %c0_i32_0 = arith.constant 0 : i32
    %c0_i32_1 = arith.constant 0 : i32
    return %c0_i32, %c0_i32_0 : i32, i32
  }
  func.func @transform_8(%arg0: i32) -> (i32, i32) {
    %c0_i32 = arith.constant 0 : i32
    %c0_i32_0 = arith.constant 0 : i32
    %c0_i32_1 = arith.constant 0 : i32
    return %c0_i32, %c0_i32_0 : i32, i32
  }
  func.func @transform_9(%arg0: i32) -> (i32, i32) {
    %c0_i32 = arith.constant 0 : i32
    %c0_i32_0 = arith.constant 0 : i32
    %c0_i32_1 = arith.constant 0 : i32
    return %c0_i32, %c0_i32_0 : i32, i32
  }
  func.func @transform_10(%arg0: i32) -> (i32, i32) {
    %c0_i32 = arith.constant 0 : i32
    %c0_i32_0 = arith.constant 0 : i32
    %c0_i32_1 = arith.constant 0 : i32
    return %c0_i32, %c0_i32_0 : i32, i32
  }
  func.func @transform_11(%arg0: i32) -> (i32, i32) {
    %c0_i32 = arith.constant 0 : i32
    %c0_i32_0 = arith.constant 0 : i32
    %c0_i32_1 = arith.constant 0 : i32
    return %c0_i32, %c0_i32_0 : i32, i32
  }
  func.func @transform_12(%arg0: i32) -> (i32, i32) {
    %c0_i32 = arith.constant 0 : i32
    %c0_i32_0 = arith.constant 0 : i32
    %c0_i32_1 = arith.constant 0 : i32
    return %c0_i32, %c0_i32_0 : i32, i32
  }
  func.func @transform_13(%arg0: i32) -> (i32, i32) {
    %c0_i32 = arith.constant 0 : i32
    %c0_i32_0 = arith.constant 0 : i32
    %c0_i32_1 = arith.constant 0 : i32
    return %c0_i32, %c0_i32_0 : i32, i32
  }
  func.func @transform_14(%arg0: i32) -> (i32, i32) {
    %c0_i32 = arith.constant 0 : i32
    %c0_i32_0 = arith.constant 0 : i32
    %c0_i32_1 = arith.constant 0 : i32
    return %c0_i32, %c0_i32_0 : i32, i32
  }
  func.func @transform_15(%arg0: i32) -> (i32, i32) {
    %c0_i32 = arith.constant 0 : i32
    %c0_i32_0 = arith.constant 0 : i32
    %c0_i32_1 = arith.constant 0 : i32
    return %c0_i32, %c0_i32_0 : i32, i32
  }
  func.func @transform_16(%arg0: i32) -> (i32, i32) {
    %c0_i32 = arith.constant 0 : i32
    %c0_i32_0 = arith.constant 0 : i32
    %c0_i32_1 = arith.constant 0 : i32
    return %c0_i32, %c0_i32_0 : i32, i32
  }
  func.func @transform_17(%arg0: i32) -> (i32, i32) {
    %c0_i32 = arith.constant 0 : i32
    %c0_i32_0 = arith.constant 0 : i32
    %c0_i32_1 = arith.constant 0 : i32
    return %c0_i32, %c0_i32_0 : i32, i32
  }
}

</mosaic_0001>

<bundles_post_ra>
// kernel: simple_mlp_forward.1
= control target key start
LH: loop header
LB: loop body
LE: loop exit
PB: predicated region body
PF: predicated region fallthrough
CT: control target
= control target key end

     0   :  { %v963_v0 = vmov 0   ;;  %vm93_vm0 = vcmask 130048   ;;  %v964_v23 = vmov 32.0   ;;  %vm217_vm5 = vcmask 261120   ;;  %s1361_s2 = inlined_call_operand.vmem [shape: f32[32,1], index: 2, kind: input, shape index: {}]   ;;  %s1362_s0 = inlined_call_operand.vmem [shape: f32[16,128], index: 0, kind: input, shape index: {}]   ;;  %s1363_s1 = inlined_call_operand.vmem [shape: f32[32,16], index: 1, kind: input, shape index: {}]   ;;  %s1364_s4 = inlined_call_operand.vmem [shape: f32[32,1], index: 4, kind: input, shape index: {}]   ;;  %s1365_s6 = inlined_call_operand.vmem [shape: f32[32,1], index: 6, kind: input, shape index: {}]   ;;  %s1366_s8 = inlined_call_operand.vmem [shape: f32[32,1], index: 8, kind: input, shape index: {}]   ;;  %s1367_s11 = inlined_call_operand.vmem [shape: f32[32,1], index: 11, kind: input, shape index: {}]   ;;  %s1368_s3 = inlined_call_operand.vmem [shape: f32[32,32], index: 3, kind: input, shape index: {}]   ;;  %s1369_s5 = inlined_call_operand.vmem [shape: f32[32,32], index: 5, kind: input, shape index: {}]   ;;  %s1370_s7 = inlined_call_operand.vmem [shape: f32[32,32], index: 7, kind: input, shape index: {}]   ;;  %s1371_s12 = inlined_call_operand.vmem [shape: f32[32,1], index: 12, kind: input, shape index: {}]   ;;  %s1372_s10 = inlined_call_operand.vmem [shape: f32[32,1], index: 10, kind: input, shape index: {}]   ;;  %s1373_s13 = inlined_call_operand.vmem [shape: f32[32,1], index: 13, kind: input, shape index: {}]   ;;  %s1374_s14 = inlined_call_operand.vmem [shape: f32[32,1], index: 14, kind: input, shape index: {}]   ;;  %s1375_s9 = inlined_call_operand.vmem [shape: f32[32,32], index: 9, kind: input, shape index: {}]   ;;  %s1376_s15 = inlined_call_operand.vmem [shape: f32[32,1], index: 15, kind: input, shape index: {}]   ;;  %s1377_s16 = inlined_call_operand.<no memory space> [shape: f32[1,1], index: 16, kind: input, shape index: {}]   ;;  %s1378_s17 = inlined_call_operand.vmem [shape: f32[1,128], index: 17, kind: output, shape index: {}]  }
   0x1   :  { %1381 = sst [smem:[#allocation3_spill]] %s1361_s2  ;;  %937 = vset.pattern.permute.xlu1 %v963_v0  ;;  %936 = vset.pattern.permute.xlu0 %v963_v0  ;;  %v65_v5 = vld [vmem:[%s1363_s1] sm:$0xff]  ;;  %v66_v6 = vld [vmem:[%s1363_s1 + $0x8] sm:$0xff]  ;;  %v67_v7 = vld [vmem:[%s1363_s1 + $0x10] sm:$0xff]  ;;  %939 = vrcp.f32 %v964_v23 }
   0x2   :  { %1382 = sst [smem:[#allocation4_spill]] %s1362_s0  ;;  %v68_v8 = vld [vmem:[%s1363_s1 + $0x18] sm:$0xff]  ;;  %938 = vset.pattern.permute.xlu2 %v963_v0  ;;  %v195_v12 = vld [vmem:[%s1364_s4 + $0x10] sm:$0xff]  ;;  %v311_v14 = vld [vmem:[%s1365_s6 + $0x8] sm:$0xff] }
   0x3   :  { %s1383_s26 = sld [smem:[#allocation3_spill]]  ;;  %v196_v11 = vld [vmem:[%s1364_s4 + $0x18] sm:$0xff]  ;;  %v312_v13 = vld [vmem:[%s1365_s6 + $0x10] sm:$0xff]  ;;  %v426_v17 = vld [vmem:[%s1366_s8] sm:$0xff] }
   0x4   :  { %s1384_s30 = sld [smem:[#allocation4_spill]]  ;;  %v428_v15 = vld [vmem:[%s1366_s8 + $0x10] sm:$0xff]  ;;  %v429_v16 = vld [vmem:[%s1366_s8 + $0x18] sm:$0xff]  ;;  %v427_v23 = vld [vmem:[%s1366_s8 + $0x8] sm:$0xff] }
   0x5   :  { %v585_v18 = vld [vmem:[%s1367_s11 + $0x10] sm:$0xff] }
   0x7   :  { %v940_v27 = vpop.eup %939 }
   0x8   :  { %v149_v35 = vmul.f32 32.0, %v940_v27  ;;  %vm153_vm1 = vweird.f32 %v940_v27 }
   0x9   :  { %v71_v1 = vld [vmem:[%s1383_s26 + $0x10] sm:$0xff]  ;;  %v69_v2 = vld [vmem:[%s1383_s26] sm:$0xff]  ;;  %v72_v9 = vld [vmem:[%s1383_s26 + $0x18] sm:$0xff] }
   0xa   :  { %v64_v3 = vld [vmem:[%s1384_s30 + $0x8] sm:$0xff]  ;;  %85 = vperm.xlu1 %937, %v71_v1   ;;  %75 = vperm.xlu0 %936, %v69_v2   ;;  %v63_v4 = vld [vmem:[%s1384_s30] sm:$0xff]  ;;  %v150_v40 = vsub.f32 1.0, %v149_v35 }
   0xb   :  { %120 = vmatpush.msra.mxu0 %v64_v3  ;;  %927 = vmatpush.msra.mxu1 %v64_v3  ;;  %v70_v10 = vld [vmem:[%s1383_s26 + $0x8] sm:$0xff] }
   0xc   :  { %928 = vmatpush.msra.mxu2 %v64_v3  ;;  %929 = vmatpush.msra.mxu3 %v64_v3  ;;  %v151_v43 = vmul.f32 %v940_v27, %v150_v40 }
   0xd   :  { %121 = vmatpush.msra.mxu0 %v63_v4  ;;  %930 = vmatpush.msra.mxu1 %v63_v4 }
   0xe   :  { %931 = vmatpush.msra.mxu2 %v63_v4  ;;  %932 = vmatpush.msra.mxu3 %v63_v4  ;;  %v152_v46 = vadd.f32 %v940_v27, %v151_v43 }
   0xf   :  { %907 = vmatmul.msk.f32.vlgmr.msra.gmra.mxu0 %vm93_vm0, %v65_v5  ;;  %908 = vmatmul.msk.f32.vlgmr.msra.gmra.mxu1 %vm93_vm0, %v66_v6  ;;  %v193_v5 = vld [vmem:[%s1364_s4] sm:$0xff] }
  0x10   :  { %909 = vmatmul.msk.f32.vlgmr.msra.gmra.mxu2 %vm93_vm0, %v67_v7  ;;  %910 = vmatmul.msk.f32.vlgmr.msra.gmra.mxu3 %vm93_vm0, %v68_v8  ;;  %v1110_v49 = vsel %vm153_vm1, %v940_v27, %v152_v46  ;;  %v194_v8 = vld [vmem:[%s1364_s4 + $0x8] sm:$0xff]  ;;  %v192_v27 = vld [vmem:[%s1368_s3 + $0x18] sm:$0xff] }
  0x11   :  { %199 = vperm.xlu2 %938, %v193_v5  }
  0x12   :  { %90 = vperm.xlu1 %937, %v72_v9   ;;  %80 = vperm.xlu0 %936, %v70_v10  }
  0x19   :  { %204 = vperm.xlu2 %938, %v194_v8  }
  0x1a   :  { %214 = vperm.xlu1 %937, %v196_v11   ;;  %209 = vperm.xlu0 %936, %v195_v12  }
  0x22   :  { %326 = vperm.xlu1 %937, %v312_v13   ;;  %321 = vperm.xlu0 %936, %v311_v14   ;;  %v310_v13 = vld [vmem:[%s1365_s6] sm:$0xff] }
  0x23   :  { %316 = vperm.xlu2 %938, %v310_v13  }
  0x2a   :  { %442 = vperm.xlu1 %937, %v428_v15   ;;  %447 = vperm.xlu0 %936, %v429_v16  }
  0x32   :  { %432 = vperm.xlu0 %936, %v426_v17  }
  0x3a   :  { %599 = vperm.xlu0 %936, %v585_v18   ;;  %v313_v18 = vld [vmem:[%s1365_s6 + $0x18] sm:$0xff] }
  0x3b   :  { %331 = vperm.xlu2 %938, %v313_v18  }
  0x43   :  { %437 = vperm.xlu2 %938, %v427_v23   ;;  %v308_v23 = vld [vmem:[%s1369_s5 + $0x10] sm:$0xff] }
  0x7c   :  { %v76_v19 = vpop.permute.xlu0 %75  ;;  %v86_v20 = vpop.permute.xlu1 %85 }
  0x84   :  { %v81_v24 = vpop.permute.xlu0 %80  ;;  %v91_v28 = vpop.permute.xlu1 %90 }
  0x8c   :  { %v123_v21 = vpop.f32.mrf.mxu0  ;;  %v126_v22 = vpop.f32.mrf.mxu1 }
  0x8d   :  { %v124_v25 = vadd.f32 %v123_v21, %v76_v19  ;;  %v127_v26 = vadd.f32 %v126_v22, %v81_v24  ;;  %v189_v22 = vld [vmem:[%s1368_s3] sm:$0xff]  ;;  %v190_v24 = vld [vmem:[%s1368_s3 + $0x8] sm:$0xff]  ;;  %v215_v40 = vpop.permute.xlu1 %214 }
  0x8f   :  { %v135_v29 = vmax.f32 %v124_v25, 0.0  ;;  %v136_v30 = vmax.f32 %v127_v26, 0.0  ;;  %v586_v25 = vld [vmem:[%s1367_s11 + $0x18] sm:$0xff]  ;;  %v191_v26 = vld [vmem:[%s1368_s3 + $0x10] sm:$0xff] }
  0x90   :  { %604 = vperm.xlu2 %938, %v586_v25  }
  0x91   :  { %v139_v36 = vadd.f32 %v136_v30, %v135_v29 }
  0x93   :  { %v129_v31 = vpop.f32.mrf.mxu2  ;;  %v132_v32 = vpop.f32.mrf.mxu3 }
  0x94   :  { %v130_v33 = vadd.f32 %v129_v31, %v86_v20  ;;  %v133_v34 = vadd.f32 %v132_v32, %v91_v28 }
  0x96   :  { %v137_v37 = vmax.f32 %v130_v33, 0.0  ;;  %v138_v39 = vmax.f32 %v133_v34, 0.0  ;;  %v210_v34 = vpop.permute.xlu0 %209 }
  0x98   :  { %v140_v38 = vadd.f32 %v139_v36, %v137_v37 }
  0x9a   :  { %v141_v41 = vadd.f32 %v140_v38, %v138_v39 }
  0x9c   :  { %v142_v42 = vrot.slane %v141_v41, 4 }
  0x9e   :  { %v143_v44 = vadd.f32 %v142_v42, %v141_v41 }
  0xa0   :  { %v144_v45 = vrot.slane %v143_v44, 2 }
  0xa2   :  { %v145_v47 = vadd.f32 %v144_v45, %v143_v44 }
  0xa4   :  { %v146_v48 = vrot.slane %v145_v47, 1 }
  0xa6   :  { %v147_v50 = vadd.f32 %v146_v48, %v145_v47 }
  0xa8   :  { %v155_v51 = vmul.f32 %v1110_v49, %v147_v50 }
  0xaa   :  { %v156_v52 = vsub.f32 %v135_v29, %v155_v51  ;;  %v157_v53 = vsub.f32 %v136_v30, %v155_v51  ;;  %v158_v54 = vsub.f32 %v137_v37, %v155_v51  ;;  %v159_v55 = vsub.f32 %v138_v39, %v155_v51  ;;  %v200_v29 = vpop.permute.xlu2 %199 }
  0xac   :  { %v160_v56 = vmul.f32 %v156_v52, %v156_v52  ;;  %v161_v57 = vmul.f32 %v157_v53, %v157_v53  ;;  %v162_v58 = vmul.f32 %v158_v54, %v158_v54  ;;  %v163_v60 = vmul.f32 %v159_v55, %v159_v55 }
  0xae   :  { %v164_v59 = vadd.f32 %v161_v57, %v160_v56 }
  0xb0   :  { %v165_v61 = vadd.f32 %v164_v59, %v162_v58 }
  0xb2   :  { %v166_v62 = vadd.f32 %v165_v61, %v163_v60  ;;  %v205_v31 = vpop.permute.xlu2 %204 }
  0xb4   :  { %v167_v63 = vrot.slane %v166_v62, 4 }
  0xb6   :  { %v168_v0 = vadd.f32 %v167_v63, %v166_v62 }
  0xb8   :  { %v169_v1 = vrot.slane %v168_v0, 2 }
  0xba   :  { %v170_v2 = vadd.f32 %v169_v1, %v168_v0 }
  0xbc   :  { %v171_v3 = vrot.slane %v170_v2, 1 }
  0xbe   :  { %v172_v4 = vadd.f32 %v171_v3, %v170_v2 }
  0xc0   :  { %v173_v6 = vmul.f32 %v172_v4, %v1110_v49 }
  0xc2   :  { %v174_v7 = vadd.f32 1e-05, %v173_v6 }
  0xc4   :  { %941 = vrsqrt.f32 %v174_v7  ;;  %vm181_vm3 = vweird.f32 %v174_v7 }
  0xca   :  { %v942_v9 = vpop.eup %941 }
  0xcb   :  { %v176_v10 = vmul.f32 %v942_v9, %v174_v7  ;;  %vm182_vm2 = vweird.f32 %v942_v9 }
  0xcc   :  { %vm183_vm4 = vmor %vm181_vm3, %vm182_vm2 }
  0xcd   :  { %v177_v11 = vmul.f32 %v942_v9, %v176_v10 }
  0xcf   :  { %v178_v12 = vmul.f32 0.5, %v177_v11 }
  0xd1   :  { %v179_v14 = vsub.f32 1.5, %v178_v12 }
  0xd3   :  { %v180_v15 = vmul.f32 %v942_v9, %v179_v14 }
  0xd5   :  { %v184_v16 = vsel %vm183_vm4, %v942_v9, %v180_v15 }
  0xd6   :  { %v188_v17 = vmul.f32 %v184_v16, %v159_v55  ;;  %v187_v19 = vmul.f32 %v184_v16, %v158_v54  ;;  %v186_v20 = vmul.f32 %v184_v16, %v157_v53  ;;  %v185_v21 = vmul.f32 %v184_v16, %v156_v52 }
  0xd8   :  { %242 = vmatpush.msrb.mxu1 %v188_v17 }
  0xda   :  { %243 = vmatpush.msrb.mxu1 %v187_v19 }
  0xdc   :  { %244 = vmatpush.msrb.mxu1 %v186_v20 }
  0xde   :  { %245 = vmatpush.msrb.mxu1 %v185_v21  ;;  %v306_v21 = vld [vmem:[%s1369_s5] sm:$0xff] }
  0xdf   :  { %911 = vmatmul.msk.f32.vlgmr.msrb.gmra.mxu1 %vm217_vm5, %v189_v22  ;;  %v307_v22 = vld [vmem:[%s1369_s5 + $0x8] sm:$0xff] }
  0xe7   :  { %912 = vmatmul.msk.f32.gmra.mxu1 %vm217_vm5, %v190_v24  ;;  %v309_v24 = vld [vmem:[%s1369_s5 + $0x18] sm:$0xff] }
  0xef   :  { %913 = vmatmul.msk.f32.gmra.mxu1 %vm217_vm5, %v191_v26 }
  0xf7   :  { %914 = vmatmul.msk.f32.gmra.mxu1 %vm217_vm5, %v192_v27  ;;  %v317_v27 = vpop.permute.xlu2 %316 }
 0x15c   :  { %v247_v28 = vpop.f32.mrf.mxu1 }
 0x15d   :  { %v248_v35 = vadd.f32 %v247_v28, %v200_v29  ;;  %v322_v28 = vpop.permute.xlu0 %321 }
 0x15f   :  { %v259_v38 = vmax.f32 %v248_v35, 0.0 }
 0x164   :  { %v250_v30 = vpop.f32.mrf.mxu1 }
 0x165   :  { %v251_v33 = vadd.f32 %v250_v30, %v205_v31  ;;  %v327_v31 = vpop.permute.xlu1 %326 }
 0x167   :  { %v260_v37 = vmax.f32 %v251_v33, 0.0 }
 0x169   :  { %v263_v42 = vadd.f32 %v260_v37, %v259_v38 }
 0x16c   :  { %v253_v32 = vpop.f32.mrf.mxu1 }
 0x16d   :  { %v254_v36 = vadd.f32 %v253_v32, %v210_v34 }
 0x16f   :  { %v261_v39 = vmax.f32 %v254_v36, 0.0 }
 0x171   :  { %v264_v44 = vadd.f32 %v263_v42, %v261_v39 }
 0x174   :  { %v256_v41 = vpop.f32.mrf.mxu1 }
 0x175   :  { %v257_v43 = vadd.f32 %v256_v41, %v215_v40 }
 0x177   :  { %v262_v45 = vmax.f32 %v257_v43, 0.0 }
 0x179   :  { %v265_v46 = vadd.f32 %v264_v44, %v262_v45 }
 0x17b   :  { %v266_v47 = vrot.slane %v265_v46, 4 }
 0x17d   :  { %v267_v48 = vadd.f32 %v266_v47, %v265_v46 }
 0x17f   :  { %v268_v50 = vrot.slane %v267_v48, 2 }
 0x181   :  { %v269_v51 = vadd.f32 %v268_v50, %v267_v48 }
 0x183   :  { %v270_v52 = vrot.slane %v269_v51, 1 }
 0x185   :  { %v271_v53 = vadd.f32 %v270_v52, %v269_v51 }
 0x187   :  { %v272_v54 = vmul.f32 %v271_v53, %v1110_v49 }
 0x189   :  { %v273_v55 = vsub.f32 %v259_v38, %v272_v54  ;;  %v274_v56 = vsub.f32 %v260_v37, %v272_v54  ;;  %v275_v57 = vsub.f32 %v261_v39, %v272_v54  ;;  %v276_v58 = vsub.f32 %v262_v45, %v272_v54  ;;  %v332_v37 = vpop.permute.xlu2 %331 }
 0x18b   :  { %v277_v59 = vmul.f32 %v273_v55, %v273_v55  ;;  %v278_v60 = vmul.f32 %v274_v56, %v274_v56  ;;  %v279_v61 = vmul.f32 %v275_v57, %v275_v57  ;;  %v280_v63 = vmul.f32 %v276_v58, %v276_v58 }
 0x18d   :  { %v281_v62 = vadd.f32 %v278_v60, %v277_v59 }
 0x18f   :  { %v282_v0 = vadd.f32 %v281_v62, %v279_v61 }
 0x191   :  { %v283_v1 = vadd.f32 %v282_v0, %v280_v63 }
 0x193   :  { %v284_v2 = vrot.slane %v283_v1, 4 }
 0x195   :  { %v285_v3 = vadd.f32 %v284_v2, %v283_v1 }
 0x197   :  { %v286_v4 = vrot.slane %v285_v3, 2 }
 0x199   :  { %v287_v5 = vadd.f32 %v286_v4, %v285_v3 }
 0x19b   :  { %v288_v6 = vrot.slane %v287_v5, 1 }
 0x19d   :  { %v289_v7 = vadd.f32 %v288_v6, %v287_v5 }
 0x19f   :  { %v290_v8 = vmul.f32 %v289_v7, %v1110_v49 }
 0x1a1   :  { %v291_v9 = vadd.f32 1e-05, %v290_v8 }
 0x1a3   :  { %943 = vrsqrt.f32 %v291_v9  ;;  %vm298_vm7 = vweird.f32 %v291_v9 }
 0x1a9   :  { %v944_v10 = vpop.eup %943 }
 0x1aa   :  { %v293_v11 = vmul.f32 %v944_v10, %v291_v9  ;;  %vm299_vm6 = vweird.f32 %v944_v10 }
 0x1ab   :  { %vm300_vm8 = vmor %vm298_vm7, %vm299_vm6 }
 0x1ac   :  { %v294_v12 = vmul.f32 %v944_v10, %v293_v11 }
 0x1ae   :  { %v295_v13 = vmul.f32 0.5, %v294_v12 }
 0x1b0   :  { %v296_v14 = vsub.f32 1.5, %v295_v13 }
 0x1b2   :  { %v297_v15 = vmul.f32 %v944_v10, %v296_v14 }
 0x1b4   :  { %v301_v16 = vsel %vm300_vm8, %v944_v10, %v297_v15 }
 0x1b5   :  { %v305_v17 = vmul.f32 %v301_v16, %v276_v58  ;;  %v304_v18 = vmul.f32 %v301_v16, %v275_v57  ;;  %v303_v19 = vmul.f32 %v301_v16, %v274_v56  ;;  %v302_v20 = vmul.f32 %v301_v16, %v273_v55 }
 0x1b7   :  { %358 = vmatpush.msrb.mxu2 %v305_v17 }
 0x1b9   :  { %359 = vmatpush.msrb.mxu2 %v304_v18  ;;  %v423_v18 = vld [vmem:[%s1370_s7 + $0x8] sm:$0xff] }
 0x1bb   :  { %360 = vmatpush.msrb.mxu2 %v303_v19  ;;  %v424_v19 = vld [vmem:[%s1370_s7 + $0x10] sm:$0xff] }
 0x1bd   :  { %361 = vmatpush.msrb.mxu2 %v302_v20  ;;  %v425_v20 = vld [vmem:[%s1370_s7 + $0x18] sm:$0xff] }
 0x1be   :  { %915 = vmatmul.msk.f32.vlgmr.msrb.gmra.mxu2 %vm217_vm5, %v306_v21  ;;  %v448_v21 = vpop.permute.xlu0 %447 }
 0x1c6   :  { %916 = vmatmul.msk.f32.gmra.mxu2 %vm217_vm5, %v307_v22  ;;  %v58_v22 = vlaneseq }
 0x1ce   :  { %917 = vmatmul.msk.f32.gmra.mxu2 %vm217_vm5, %v308_v23  ;;  %v59_v23 = vand.u32 127, %v58_v22 }
 0x1d0   :  { %vm60_vm12 = vcmp.lt.s32.totalorder %v59_v23, 8 }
 0x1d6   :  { %918 = vmatmul.msk.f32.gmra.mxu2 %vm217_vm5, %v309_v24  ;;  %v433_v24 = vpop.permute.xlu0 %432 }
 0x241   :  { %v363_v25 = vpop.f32.mrf.mxu2 }
 0x242   :  { %v364_v32 = vadd.f32 %v363_v25, %v317_v27  ;;  %v965_v27 = vmov 0.0  }
 0x244   :  { %v375_v35 = vmax.f32 %v364_v32, 0.0 }
 0x249   :  { %v366_v26 = vpop.f32.mrf.mxu2 }
 0x24a   :  { %v367_v30 = vadd.f32 %v366_v26, %v322_v28  ;;  %v1184_v28 = vsel %vm60_vm12, 1.0, %v965_v27 }
 0x24c   :  { %v376_v34 = vmax.f32 %v367_v30, 0.0 }
 0x24e   :  { %v379_v39 = vadd.f32 %v376_v34, %v375_v35 }
 0x251   :  { %v369_v29 = vpop.f32.mrf.mxu2 }
 0x252   :  { %v370_v33 = vadd.f32 %v369_v29, %v327_v31  ;;  %v438_v31 = vpop.permute.xlu2 %437 }
 0x254   :  { %v377_v36 = vmax.f32 %v370_v33, 0.0 }
 0x256   :  { %v380_v41 = vadd.f32 %v379_v39, %v377_v36 }
 0x259   :  { %v372_v38 = vpop.f32.mrf.mxu2 }
 0x25a   :  { %v373_v40 = vadd.f32 %v372_v38, %v332_v37 }
 0x25c   :  { %v378_v42 = vmax.f32 %v373_v40, 0.0 }
 0x25e   :  { %v381_v43 = vadd.f32 %v380_v41, %v378_v42 }
 0x260   :  { %v382_v44 = vrot.slane %v381_v43, 4 }
 0x262   :  { %v383_v45 = vadd.f32 %v382_v44, %v381_v43 }
 0x264   :  { %v384_v46 = vrot.slane %v383_v45, 2 }
 0x266   :  { %v385_v47 = vadd.f32 %v384_v46, %v383_v45  ;;  %v584_v45 = vld [vmem:[%s1367_s11 + $0x8] sm:$0xff]  ;;  %v613_v46 = vld [vmem:[%s1371_s12 + $0x10] sm:$0xff] }
 0x268   :  { %v386_v48 = vrot.slane %v385_v47, 1 }
 0x26a   :  { %v387_v50 = vadd.f32 %v386_v48, %v385_v47  ;;  %v614_v47 = vld [vmem:[%s1371_s12 + $0x18] sm:$0xff]  ;;  %v1199_v48 = vpop.permute.xlu2 %604 }
 0x26c   :  { %v388_v51 = vmul.f32 %v387_v50, %v1110_v49  ;;  %v1201_v50 = vpop.permute.xlu0 %599 }
 0x26e   :  { %v389_v52 = vsub.f32 %v375_v35, %v388_v51  ;;  %v390_v53 = vsub.f32 %v376_v34, %v388_v51  ;;  %v391_v54 = vsub.f32 %v377_v36, %v388_v51  ;;  %v392_v55 = vsub.f32 %v378_v42, %v388_v51  ;;  %v443_v36 = vpop.permute.xlu1 %442 }
 0x270   :  { %v393_v56 = vmul.f32 %v389_v52, %v389_v52  ;;  %v394_v57 = vmul.f32 %v390_v53, %v390_v53  ;;  %v395_v58 = vmul.f32 %v391_v54, %v391_v54  ;;  %v396_v60 = vmul.f32 %v392_v55, %v392_v55 }
 0x272   :  { %v397_v59 = vadd.f32 %v394_v57, %v393_v56 }
 0x274   :  { %v398_v61 = vadd.f32 %v397_v59, %v395_v58 }
 0x276   :  { %v399_v62 = vadd.f32 %v398_v61, %v396_v60 }
 0x278   :  { %v400_v63 = vrot.slane %v399_v62, 4 }
 0x27a   :  { %v401_v0 = vadd.f32 %v400_v63, %v399_v62 }
 0x27c   :  { %v402_v1 = vrot.slane %v401_v0, 2 }
 0x27e   :  { %v403_v2 = vadd.f32 %v402_v1, %v401_v0 }
 0x280   :  { %v404_v3 = vrot.slane %v403_v2, 1 }
 0x282   :  { %v405_v4 = vadd.f32 %v404_v3, %v403_v2 }
 0x284   :  { %v406_v5 = vmul.f32 %v405_v4, %v1110_v49  ;;  %v422_v49 = vld [vmem:[%s1370_s7] sm:$0xff] }
 0x286   :  { %v407_v6 = vadd.f32 1e-05, %v406_v5 }
 0x288   :  { %945 = vrsqrt.f32 %v407_v6  ;;  %vm414_vm10 = vweird.f32 %v407_v6 }
 0x28e   :  { %v946_v7 = vpop.eup %945 }
 0x28f   :  { %v409_v8 = vmul.f32 %v946_v7, %v407_v6  ;;  %vm415_vm9 = vweird.f32 %v946_v7 }
 0x290   :  { %vm416_vm11 = vmor %vm414_vm10, %vm415_vm9 }
 0x291   :  { %v410_v9 = vmul.f32 %v946_v7, %v409_v8  ;;  %v644_v8 = vld [vmem:[%s1372_s10 + $0x8] sm:$0xff] }
 0x293   :  { %v411_v10 = vmul.f32 0.5, %v410_v9  ;;  %v611_v9 = vld [vmem:[%s1371_s12] sm:$0xff] }
 0x295   :  { %v412_v11 = vsub.f32 1.5, %v411_v10  ;;  %v801_v10 = vld [vmem:[%s1373_s13 + $0x8] sm:$0xff] }
 0x297   :  { %v413_v12 = vmul.f32 %v946_v7, %v412_v11  ;;  %v645_v11 = vld [vmem:[%s1372_s10 + $0x10] sm:$0xff] }
 0x299   :  { %v417_v13 = vsel %vm416_vm11, %v946_v7, %v413_v12  ;;  %v612_v7 = vld [vmem:[%s1371_s12 + $0x8] sm:$0xff]  ;;  %v583_v12 = vld [vmem:[%s1367_s11] sm:$0xff] }
 0x29a   :  { %v421_v14 = vmul.f32 %v417_v13, %v392_v55  ;;  %v420_v15 = vmul.f32 %v417_v13, %v391_v54  ;;  %v419_v16 = vmul.f32 %v417_v13, %v390_v53  ;;  %v418_v17 = vmul.f32 %v417_v13, %v389_v52  ;;  %v828_v13 = vld [vmem:[%s1374_s14] sm:$0xff] }
 0x29c   :  { %474 = vmatpush.msrb.mxu3 %v421_v14  ;;  %v802_v14 = vld [vmem:[%s1373_s13 + $0x10] sm:$0xff] }
 0x29e   :  { %475 = vmatpush.msrb.mxu3 %v420_v15  ;;  %v643_v15 = vld [vmem:[%s1372_s10] sm:$0xff] }
 0x2a0   :  { %476 = vmatpush.msrb.mxu3 %v419_v16  ;;  %v803_v16 = vld [vmem:[%s1373_s13 + $0x18] sm:$0xff] }
 0x2a2   :  { %477 = vmatpush.msrb.mxu3 %v418_v17  ;;  %v646_v17 = vld [vmem:[%s1372_s10 + $0x18] sm:$0xff] }
 0x2a3   :  { %919 = vmatmul.msk.f32.vlgmr.msrb.gmra.mxu3 %vm217_vm5, %v422_v49  ;;  %v800_v49 = vld [vmem:[%s1373_s13] sm:$0xff] }
 0x2ab   :  { %920 = vmatmul.msk.f32.gmra.mxu3 %vm217_vm5, %v423_v18  ;;  %v829_v18 = vld [vmem:[%s1374_s14 + $0x8] sm:$0xff] }
 0x2b3   :  { %921 = vmatmul.msk.f32.gmra.mxu3 %vm217_vm5, %v424_v19 }
 0x2bb   :  { %922 = vmatmul.msk.f32.gmra.mxu3 %vm217_vm5, %v425_v20 }
 0x326   :  { %v479_v25 = vpop.f32.mrf.mxu3 }
 0x327   :  { %v480_v26 = vadd.f32 %v479_v25, %v433_v24 }
 0x329   :  { %v491_v29 = vmax.f32 %v480_v26, 0.0 }
 0x32b   :  { %v495_v30 = vmul.f32 %v1184_v28, %v491_v29 }
 0x32d   :  { %499 = vadd.xlane.f32.xlu2 %v495_v30 }
 0x32e   :  { %v482_v32 = vpop.f32.mrf.mxu3 }
 0x32f   :  { %v483_v33 = vadd.f32 %v482_v32, %v438_v31 }
 0x331   :  { %v492_v34 = vmax.f32 %v483_v33, 0.0 }
 0x333   :  { %v496_v35 = vmul.f32 %v1184_v28, %v492_v34 }
 0x335   :  { %501 = vadd.xlane.f32.xlu0 %v496_v35 }
 0x336   :  { %v485_v37 = vpop.f32.mrf.mxu3 }
 0x337   :  { %v486_v38 = vadd.f32 %v485_v37, %v443_v36 }
 0x339   :  { %v493_v39 = vmax.f32 %v486_v38, 0.0 }
 0x33b   :  { %v497_v40 = vmul.f32 %v1184_v28, %v493_v39 }
 0x33d   :  { %503 = vadd.xlane.f32.xlu2 %v497_v40 }
 0x33e   :  { %v488_v41 = vpop.f32.mrf.mxu3 }
 0x33f   :  { %v489_v42 = vadd.f32 %v488_v41, %v448_v21 }
 0x341   :  { %v494_v43 = vmax.f32 %v489_v42, 0.0 }
 0x343   :  { %v498_v44 = vmul.f32 %v1184_v28, %v494_v43 }
 0x345   :  { %505 = vadd.xlane.f32.xlu1 %v498_v44 }
 0x349   :  { %594 = vperm.xlu0 %936, %v584_v45  }
 0x355   :  { %627 = vperm.xlu2 %938, %v613_v46  }
 0x35e   :  { %632 = vperm.xlu1 %937, %v614_v47  }
 0x3a0   :  { %v500_v51 = vpop.xlane.xlu2 %499 }
 0x3a1   :  { %v507_v52 = vmul.f32 0.125, %v500_v51 }
 0x3a3   :  { %v1203_v53 = vsub.f32 %v491_v29, %v507_v52 }
 0x3a5   :  { %v515_v54 = vmul.f32 %v1184_v28, %v1203_v53 }
 0x3a7   :  { %v519_v55 = vmul.f32 %v515_v54, %v515_v54 }
 0x3a8   :  { %v502_v56 = vpop.xlane.xlu0 %501 }
 0x3a9   :  { %v508_v57 = vmul.f32 0.125, %v502_v56  ;;  %523 = vadd.xlane.f32.xlu1 %v519_v55 }
 0x3ab   :  { %v1207_v58 = vsub.f32 %v492_v34, %v508_v57 }
 0x3ad   :  { %v516_v59 = vmul.f32 %v1184_v28, %v1207_v58 }
 0x3af   :  { %v520_v60 = vmul.f32 %v516_v59, %v516_v59 }
 0x3b0   :  { %v504_v61 = vpop.xlane.xlu2 %503 }
 0x3b1   :  { %v509_v62 = vmul.f32 0.125, %v504_v61  ;;  %525 = vadd.xlane.f32.xlu0 %v520_v60 }
 0x3b3   :  { %v1211_v63 = vsub.f32 %v493_v39, %v509_v62 }
 0x3b5   :  { %v517_v0 = vmul.f32 %v1184_v28, %v1211_v63 }
 0x3b7   :  { %v521_v1 = vmul.f32 %v517_v0, %v517_v0 }
 0x3b8   :  { %v506_v2 = vpop.xlane.xlu1 %505  ;;  %v1262_v22 = vpop.permute.xlu2 %627 }
 0x3b9   :  { %v510_v3 = vmul.f32 0.125, %v506_v2  ;;  %527 = vadd.xlane.f32.xlu2 %v521_v1 }
 0x3bb   :  { %v1215_v4 = vsub.f32 %v494_v43, %v510_v3  ;;  %v1260_v20 = vpop.permute.xlu0 %594 }
 0x3bd   :  { %v518_v5 = vmul.f32 %v1184_v28, %v1215_v4 }
 0x3bf   :  { %v522_v6 = vmul.f32 %v518_v5, %v518_v5 }
 0x3c1   :  { %529 = vadd.xlane.f32.xlu1 %v522_v6 }
 0x3c5   :  { %622 = vperm.xlu0 %936, %v612_v7  }
 0x3cd   :  { %654 = vperm.xlu0 %936, %v644_v8  }
 0x3d0   :  { %v1258_v19 = vpop.permute.xlu1 %632 }
 0x3d1   :  { %617 = vperm.xlu2 %938, %v611_v9  }
 0x3d5   :  { %811 = vperm.xlu0 %936, %v801_v10  }
 0x3d9   :  { %659 = vperm.xlu2 %938, %v645_v11  }
 0x3da   :  { %589 = vperm.xlu1 %937, %v583_v12  }
 0x3dd   :  { %834 = vperm.xlu0 %936, %v828_v13  }
 0x3e1   :  { %816 = vperm.xlu2 %938, %v802_v14  }
 0x3e2   :  { %649 = vperm.xlu1 %937, %v643_v15  }
 0x3e9   :  { %821 = vperm.xlu2 %938, %v803_v16  }
 0x3ea   :  { %664 = vperm.xlu1 %937, %v646_v17  }
 0x3f2   :  { %806 = vperm.xlu1 %937, %v800_v49   ;;  %v642_v49 = vld [vmem:[%s1375_s9 + $0x18] sm:$0xff] }
 0x3fa   :  { %839 = vperm.xlu1 %937, %v829_v18  }
 0x41c   :  { %v524_v21 = vpop.xlane.xlu1 %523 }
 0x41d   :  { %v531_v25 = vmul.f32 0.125, %v524_v21 }
 0x41f   :  { %v535_v27 = vadd.f32 1e-05, %v531_v25 }
 0x421   :  { %vm545_vm8 = vweird.f32 %v535_v27 }
 0x424   :  { %v526_v23 = vpop.xlane.xlu0 %525 }
 0x425   :  { %v532_v24 = vmul.f32 0.125, %v526_v23 }
 0x427   :  { %v536_v26 = vadd.f32 1e-05, %v532_v24 }
 0x429   :  { %947 = vrsqrt.f32 %v536_v26  ;;  %vm555_vm1 = vweird.f32 %v536_v26 }
 0x42a   :  { %949 = vrsqrt.f32 %v535_v27 }
 0x42c   :  { %v528_v29 = vpop.xlane.xlu2 %527 }
 0x42d   :  { %v533_v30 = vmul.f32 0.125, %v528_v29 }
 0x42f   :  { %v537_v31 = vadd.f32 1e-05, %v533_v30  ;;  %v948_v32 = vpop.eup %947 }
 0x430   :  { %v950_v33 = vpop.eup %949  ;;  %v550_v34 = vmul.f32 %v948_v32, %v536_v26  ;;  %vm556_vm14 = vweird.f32 %v948_v32 }
 0x431   :  { %951 = vrsqrt.f32 %v537_v31  ;;  %v540_v38 = vmul.f32 %v950_v33, %v535_v27  ;;  %vm565_vm15 = vweird.f32 %v537_v31  ;;  %vm557_vm3 = vmor %vm555_vm1, %vm556_vm14  ;;  %vm546_vm4 = vweird.f32 %v950_v33 }
 0x432   :  { %v551_v40 = vmul.f32 %v948_v32, %v550_v34  ;;  %vm547_vm9 = vmor %vm545_vm8, %vm546_vm4 }
 0x433   :  { %v541_v43 = vmul.f32 %v950_v33, %v540_v38 }
 0x434   :  { %v530_v35 = vpop.xlane.xlu1 %529  ;;  %v552_v44 = vmul.f32 0.5, %v551_v40  ;;  %v856_v40 = vld [vmem:[%s1376_s15] sm:$0xff] }
 0x435   :  { %v534_v36 = vmul.f32 0.125, %v530_v35  ;;  %v542_v51 = vmul.f32 0.5, %v541_v43 }
 0x436   :  { %v553_v52 = vsub.f32 1.5, %v552_v44 }
 0x437   :  { %v952_v37 = vpop.eup %951  ;;  %v538_v39 = vadd.f32 1e-05, %v534_v36  ;;  %v543_v57 = vsub.f32 1.5, %v542_v51 }
 0x438   :  { %v560_v41 = vmul.f32 %v952_v37, %v537_v31  ;;  %vm566_vm13 = vweird.f32 %v952_v37  ;;  %v554_v60 = vmul.f32 %v948_v32, %v553_v52 }
 0x439   :  { %953 = vrsqrt.f32 %v538_v39  ;;  %vm567_vm0 = vmor %vm565_vm15, %vm566_vm13  ;;  %vm575_vm6 = vweird.f32 %v538_v39  ;;  %v544_v2 = vmul.f32 %v950_v33, %v543_v57 }
 0x43a   :  { %v561_v42 = vmul.f32 %v952_v37, %v560_v41  ;;  %v558_v1 = vsel %vm557_vm3, %v948_v32, %v554_v60  ;;  %v830_v41 = vld [vmem:[%s1374_s14 + $0x10] sm:$0xff] }
 0x43b   :  { %v580_v6 = vmul.f32 %v558_v1, %v1207_v58  ;;  %v548_v8 = vsel %vm547_vm9, %v950_v33, %v544_v2  ;;  %v623_v58 = vpop.permute.xlu0 %622 }
 0x43c   :  { %v562_v45 = vmul.f32 0.5, %v561_v42  ;;  %v579_v13 = vmul.f32 %v548_v8, %v1203_v53  ;;  %v641_v53 = vld [vmem:[%s1375_s9 + $0x10] sm:$0xff] }
 0x43d   :  { %v608_v12 = vmul.f32 %v1260_v20, %v580_v6 }
 0x43e   :  { %v563_v46 = vsub.f32 1.5, %v562_v45 }
 0x43f   :  { %v954_v47 = vpop.eup %953  ;;  %v636_v16 = vadd.f32 %v623_v58, %v608_v12  ;;  %v858_v12 = vld [vmem:[%s1376_s15 + $0x10] sm:$0xff] }
 0x440   :  { %v570_v54 = vmul.f32 %v954_v47, %v538_v39  ;;  %v564_v55 = vmul.f32 %v952_v37, %v563_v46  ;;  %vm576_vm2 = vweird.f32 %v954_v47  ;;  %v857_v39 = vld [vmem:[%s1376_s15 + $0x8] sm:$0xff] }
 0x441   :  { %vm577_vm7 = vmor %vm575_vm6, %vm576_vm2 }
 0x442   :  { %v571_v56 = vmul.f32 %v954_v47, %v570_v54  ;;  %v568_v62 = vsel %vm567_vm0, %v952_v37, %v564_v55 }
 0x443   :  { %v581_v3 = vmul.f32 %v568_v62, %v1211_v63  ;;  %v655_v23 = vpop.permute.xlu0 %654 }
 0x444   :  { %v572_v59 = vmul.f32 0.5, %v571_v56 }
 0x445   :  { %v609_v10 = vmul.f32 %v1201_v50, %v581_v3  ;;  %v640_v50 = vld [vmem:[%s1375_s9 + $0x8] sm:$0xff] }
 0x446   :  { %v573_v61 = vsub.f32 1.5, %v572_v59 }
 0x447   :  { %v637_v15 = vadd.f32 %v1262_v22, %v609_v10 }
 0x448   :  { %v574_v0 = vmul.f32 %v954_v47, %v573_v61  ;;  %v22_v61 = vstv %s1377_s16 }
 0x449   :  { %23 = vst [vmem:[#allocation2] sm:$0x1] %v22_v61 }
 0x44a   :  { %v578_v5 = vsel %vm577_vm7, %v954_v47, %v574_v0 }
 0x44b   :  { %v582_v7 = vmul.f32 %v578_v5, %v1215_v4  ;;  %v618_v4 = vpop.permute.xlu2 %617  ;;  %v1302_v42 = vpop.permute.xlu0 %811 }
 0x44c   :  { %v590_v11 = vpop.permute.xlu1 %589 }
 0x44d   :  { %v610_v9 = vmul.f32 %v1199_v48, %v582_v7  ;;  %v607_v63 = vmul.f32 %v590_v11, %v579_v13  ;;  %v639_v48 = vld [vmem:[%s1375_s9] sm:$0xff]  ;;  %v831_v13 = vld [vmem:[%s1374_s14 + $0x18] sm:$0xff] }
 0x44f   :  { %v638_v14 = vadd.f32 %v1258_v19, %v610_v9  ;;  %v635_v17 = vadd.f32 %v618_v4, %v607_v63  ;;  %v859_v63 = vld [vmem:[%s1376_s15 + $0x18] sm:$0xff] }
 0x451   :  { %691 = vmatpush.msrb.mxu0 %v638_v14  ;;  %v893_v14 = vld [vmem:[#allocation2] sm:$0x1] }
 0x453   :  { %692 = vmatpush.msrb.mxu0 %v637_v15  ;;  %v660_v29 = vpop.permute.xlu2 %659  ;;  %v1306_v44 = vpop.permute.xlu0 %834 }
 0x454   :  { %v650_v18 = vpop.permute.xlu1 %649 }
 0x455   :  { %693 = vmatpush.msrb.mxu0 %v636_v16 }
 0x457   :  { %694 = vmatpush.msrb.mxu0 %v635_v17 }
 0x458   :  { %923 = vmatmul.msk.f32.vlgmr.msrb.gmra.mxu0 %vm217_vm5, %v639_v48 }
 0x45b   :  { %v1304_v43 = vpop.permute.xlu2 %816 }
 0x45c   :  { %v665_v34 = vpop.permute.xlu1 %664 }
 0x460   :  { %924 = vmatmul.msk.f32.gmra.mxu0 %vm217_vm5, %v640_v50 }
 0x463   :  { %v1310_v46 = vpop.permute.xlu2 %821 }
 0x464   :  { %v1308_v45 = vpop.permute.xlu1 %806 }
 0x468   :  { %925 = vmatmul.msk.f32.gmra.mxu0 %vm217_vm5, %v641_v53 }
 0x46c   :  { %v1316_v56 = vpop.permute.xlu1 %839 }
 0x470   :  { %926 = vmatmul.msk.f32.gmra.mxu0 %vm217_vm5, %v642_v49 }
 0x4d5   :  { %v696_v19 = vpop.f32.mrf.mxu0 }
 0x4d6   :  { %v697_v20 = vadd.f32 %v696_v19, %v650_v18 }
 0x4d8   :  { %v708_v21 = vmax.f32 %v697_v20, 0.0 }
 0x4da   :  { %v712_v22 = vmul.f32 %v1184_v28, %v708_v21 }
 0x4dc   :  { %716 = vadd.xlane.f32.xlu0 %v712_v22 }
 0x4dd   :  { %v699_v24 = vpop.f32.mrf.mxu0 }
 0x4de   :  { %v700_v25 = vadd.f32 %v699_v24, %v655_v23 }
 0x4e0   :  { %v709_v26 = vmax.f32 %v700_v25, 0.0 }
 0x4e2   :  { %v713_v27 = vmul.f32 %v1184_v28, %v709_v26 }
 0x4e4   :  { %718 = vadd.xlane.f32.xlu2 %v713_v27 }
 0x4e5   :  { %v702_v30 = vpop.f32.mrf.mxu0 }
 0x4e6   :  { %v703_v31 = vadd.f32 %v702_v30, %v660_v29 }
 0x4e8   :  { %v710_v32 = vmax.f32 %v703_v31, 0.0 }
 0x4ea   :  { %v714_v33 = vmul.f32 %v1184_v28, %v710_v32 }
 0x4ec   :  { %720 = vadd.xlane.f32.xlu1 %v714_v33 }
 0x4ed   :  { %v705_v35 = vpop.f32.mrf.mxu0 }
 0x4ee   :  { %v706_v36 = vadd.f32 %v705_v35, %v665_v34 }
 0x4f0   :  { %v711_v37 = vmax.f32 %v706_v36, 0.0 }
 0x4f2   :  { %v715_v38 = vmul.f32 %v1184_v28, %v711_v37 }
 0x4f4   :  { %722 = vadd.xlane.f32.xlu0 %v715_v38 }
 0x4fc   :  { %867 = vperm.xlu2 %938, %v857_v39  }
 0x505   :  { %862 = vperm.xlu1 %937, %v856_v40  }
 0x508   :  { %844 = vperm.xlu0 %936, %v830_v41  }
 0x54f   :  { %v717_v47 = vpop.xlane.xlu0 %716 }
 0x550   :  { %v724_v51 = vmul.f32 0.125, %v717_v47 }
 0x552   :  { %v1312_v52 = vsub.f32 %v708_v21, %v724_v51 }
 0x554   :  { %v732_v54 = vmul.f32 %v1184_v28, %v1312_v52 }
 0x556   :  { %v736_v55 = vmul.f32 %v732_v54, %v732_v54 }
 0x557   :  { %v719_v57 = vpop.xlane.xlu2 %718 }
 0x558   :  { %v725_v59 = vmul.f32 0.125, %v719_v57  ;;  %740 = vadd.xlane.f32.xlu2 %v736_v55 }
 0x55a   :  { %v1318_v60 = vsub.f32 %v709_v26, %v725_v59 }
 0x55c   :  { %v733_v62 = vmul.f32 %v1184_v28, %v1318_v60 }
 0x55e   :  { %v737_v0 = vmul.f32 %v733_v62, %v733_v62 }
 0x55f   :  { %v721_v1 = vpop.xlane.xlu1 %720 }
 0x560   :  { %v726_v2 = vmul.f32 0.125, %v721_v1  ;;  %742 = vadd.xlane.f32.xlu1 %v737_v0 }
 0x562   :  { %v1325_v3 = vsub.f32 %v710_v32, %v726_v2 }
 0x564   :  { %v734_v5 = vmul.f32 %v1184_v28, %v1325_v3 }
 0x566   :  { %v738_v6 = vmul.f32 %v734_v5, %v734_v5 }
 0x567   :  { %v723_v7 = vpop.xlane.xlu0 %722 }
 0x568   :  { %v727_v8 = vmul.f32 0.125, %v723_v7  ;;  %744 = vadd.xlane.f32.xlu0 %v738_v6 }
 0x56a   :  { %v1329_v9 = vsub.f32 %v711_v37, %v727_v8 }
 0x56c   :  { %v735_v10 = vmul.f32 %v1184_v28, %v1329_v9  ;;  %v1342_v28 = vpop.permute.xlu2 %867 }
 0x56e   :  { %v739_v11 = vmul.f32 %v735_v10, %v735_v10 }
 0x570   :  { %746 = vadd.xlane.f32.xlu2 %v739_v11 }
 0x577   :  { %v1344_v15 = vpop.permute.xlu1 %862 }
 0x579   :  { %872 = vperm.xlu1 %937, %v858_v12  }
 0x57a   :  { %v845_v17 = vpop.permute.xlu0 %844 }
 0x57c   :  { %849 = vperm.xlu0 %936, %v831_v13  }
 0x584   :  { %896 = vperm.xlu0 %936, %v893_v14  }
 0x588   :  { %877 = vperm.xlu2 %938, %v859_v63  }
 0x5cb   :  { %v741_v58 = vpop.xlane.xlu2 %740 }
 0x5cc   :  { %v748_v16 = vmul.f32 0.125, %v741_v58 }
 0x5ce   :  { %v752_v4 = vadd.f32 1e-05, %v748_v16 }
 0x5d0   :  { %955 = vrsqrt.f32 %v752_v4  ;;  %vm762_vm13 = vweird.f32 %v752_v4 }
 0x5d3   :  { %v743_v48 = vpop.xlane.xlu1 %742 }
 0x5d4   :  { %v749_v50 = vmul.f32 0.125, %v743_v48 }
 0x5d6   :  { %v956_v53 = vpop.eup %955  ;;  %v753_v49 = vadd.f32 1e-05, %v749_v50 }
 0x5d7   :  { %v757_v18 = vmul.f32 %v956_v53, %v752_v4  ;;  %vm763_vm10 = vweird.f32 %v956_v53 }
 0x5d8   :  { %957 = vrsqrt.f32 %v753_v49  ;;  %vm772_vm11 = vweird.f32 %v753_v49  ;;  %vm764_vm14 = vmor %vm762_vm13, %vm763_vm10 }
 0x5d9   :  { %v758_v21 = vmul.f32 %v956_v53, %v757_v18 }
 0x5db   :  { %v745_v19 = vpop.xlane.xlu0 %744  ;;  %v759_v25 = vmul.f32 0.5, %v758_v21 }
 0x5dc   :  { %v750_v20 = vmul.f32 0.125, %v745_v19 }
 0x5dd   :  { %v760_v31 = vsub.f32 1.5, %v759_v25 }
 0x5de   :  { %v958_v22 = vpop.eup %957  ;;  %v754_v23 = vadd.f32 1e-05, %v750_v20 }
 0x5df   :  { %v767_v24 = vmul.f32 %v958_v22, %v753_v49  ;;  %vm773_vm5 = vweird.f32 %v958_v22  ;;  %v761_v37 = vmul.f32 %v956_v53, %v760_v31 }
 0x5e0   :  { %959 = vrsqrt.f32 %v754_v23  ;;  %vm774_vm12 = vmor %vm772_vm11, %vm773_vm5  ;;  %vm782_vm0 = vweird.f32 %v754_v23 }
 0x5e1   :  { %v768_v26 = vmul.f32 %v958_v22, %v767_v24  ;;  %v765_v41 = vsel %vm764_vm14, %v956_v53, %v761_v37 }
 0x5e2   :  { %v796_v59 = vmul.f32 %v765_v41, %v1312_v52 }
 0x5e3   :  { %v769_v27 = vmul.f32 0.5, %v768_v26  ;;  %v747_v29 = vpop.xlane.xlu2 %746 }
 0x5e4   :  { %v751_v30 = vmul.f32 0.125, %v747_v29  ;;  %v824_v6 = vmul.f32 %v1308_v45, %v796_v59 }
 0x5e5   :  { %v770_v32 = vsub.f32 1.5, %v769_v27 }
 0x5e6   :  { %v960_v33 = vpop.eup %959  ;;  %v755_v34 = vadd.f32 1e-05, %v751_v30  ;;  %v852_v10 = vadd.f32 %v1306_v44, %v824_v6 }
 0x5e7   :  { %v771_v35 = vmul.f32 %v958_v22, %v770_v32  ;;  %v777_v36 = vmul.f32 %v960_v33, %v754_v23  ;;  %vm783_vm15 = vweird.f32 %v960_v33 }
 0x5e8   :  { %961 = vrsqrt.f32 %v755_v34  ;;  %vm784_vm1 = vmor %vm782_vm0, %vm783_vm15  ;;  %vm792_vm3 = vweird.f32 %v755_v34 }
 0x5e9   :  { %v778_v38 = vmul.f32 %v960_v33, %v777_v36  ;;  %v775_v39 = vsel %vm774_vm12, %v958_v22, %v771_v35 }
 0x5ea   :  { %v797_v54 = vmul.f32 %v775_v39, %v1318_v60 }
 0x5eb   :  { %v779_v40 = vmul.f32 0.5, %v778_v38  ;;  %v873_v12 = vpop.permute.xlu1 %872  ;;  %v878_v58 = vpop.permute.xlu2 %877 }
 0x5ec   :  { %v825_v1 = vmul.f32 %v1302_v42, %v797_v54 }
 0x5ed   :  { %v780_v47 = vsub.f32 1.5, %v779_v40 }
 0x5ee   :  { %v962_v51 = vpop.eup %961  ;;  %v853_v60 = vadd.f32 %v1316_v56, %v825_v1  ;;  %v850_v14 = vpop.permute.xlu0 %849 }
 0x5ef   :  { %v781_v55 = vmul.f32 %v960_v33, %v780_v47  ;;  %v787_v57 = vmul.f32 %v962_v51, %v755_v34  ;;  %vm793_vm2 = vweird.f32 %v962_v51 }
 0x5f0   :  { %vm794_vm4 = vmor %vm792_vm3, %vm793_vm2 }
 0x5f1   :  { %v788_v61 = vmul.f32 %v962_v51, %v787_v57  ;;  %v785_v62 = vsel %vm784_vm1, %v960_v33, %v781_v55 }
 0x5f2   :  { %v798_v0 = vmul.f32 %v785_v62, %v1325_v3  ;;  %v881_v3 = vmul.f32 %v1342_v28, %v853_v60 }
 0x5f3   :  { %v789_v2 = vmul.f32 0.5, %v788_v61 }
 0x5f4   :  { %v826_v5 = vmul.f32 %v1304_v43, %v798_v0  ;;  %v880_v43 = vmul.f32 %v1344_v15, %v852_v10 }
 0x5f5   :  { %v790_v7 = vsub.f32 1.5, %v789_v2 }
 0x5f6   :  { %v854_v52 = vadd.f32 %v845_v17, %v826_v5  ;;  %v884_v63 = vadd.f32 %v881_v3, %v880_v43  ;;  %v897_v28 = vpop.permute.xlu0 %896 }
 0x5f7   :  { %v791_v8 = vmul.f32 %v962_v51, %v790_v7  ;;  %v899_v18 = vperm.slane %v897_v28, 0 }
 0x5f8   :  { %v882_v13 = vmul.f32 %v873_v12, %v854_v52 }
 0x5f9   :  { %v795_v11 = vsel %vm794_vm4, %v962_v51, %v791_v8 }
 0x5fa   :  { %v799_v42 = vmul.f32 %v795_v11, %v1329_v9  ;;  %v885_v16 = vadd.f32 %v884_v63, %v882_v13 }
 0x5fc   :  { %v827_v45 = vmul.f32 %v1310_v46, %v799_v42 }
 0x5fe   :  { %v855_v56 = vadd.f32 %v850_v14, %v827_v45 }
 0x600   :  { %v883_v4 = vmul.f32 %v878_v58, %v855_v56 }
 0x602   :  { %v886_v17 = vadd.f32 %v885_v16, %v883_v4 }
 0x604   :  { %v887_v48 = vrot.slane %v886_v17, 4 }
 0x606   :  { %v888_v44 = vadd.f32 %v887_v48, %v886_v17 }
 0x608   :  { %v889_v50 = vrot.slane %v888_v44, 2 }
 0x60a   :  { %v890_v53 = vadd.f32 %v889_v50, %v888_v44 }
 0x60c   :  { %v891_v49 = vrot.slane %v890_v53, 1 }
 0x60e   :  { %v892_v9 = vadd.f32 %v891_v49, %v890_v53 }
 0x610   :  { %v900_v19 = vadd.f32 %v899_v18, %v892_v9 }
 0x612   :  { %901 = vst [vmem:[%s1378_s17] sm:$0x1] %v900_v19 }

</bundles_post_ra>
